<compile_context>
chip_gen: v7x
topology: tpu7x:2x2x1
jax: 0.10.0
libtpu: 0.0.40
codegen_flags: <defaults>
</compile_context>

<pallas_src>
import jax
import jax.numpy as jnp
from jax.experimental import pallas as pl
from jax.experimental.pallas import tpu as pltpu


def integrated_kernel(x3d_ref, x2d1_ref, x2d2_ref, x2d3_ref,
                      wa_ref, ba_ref, wvo_ref, bvo_ref,
                      wc_ref, bc_ref, out_ref):
    # attention_layer (512 -> 128) + softmax over the last dim (f32 math).
    g = jnp.dot(x3d_ref[...], wa_ref[...],
                preferred_element_type=jnp.float32) + ba_ref[...]
    g = g - jnp.max(g, axis=-1, keepdims=True)
    e = jnp.exp(g)
    # Division on the EUP slot (exact reciprocal; approx=True is gated on the
    # 1e-4 tolerance, so not used).
    g = e * pl.reciprocal(jnp.sum(e, axis=-1, keepdims=True), approx=False)

    # MHA with Q=K=V and sequence length 1: softmax over a single key is 1.0,
    # so attention output == out_proj(v_proj(g)); both projections are fused
    # offline into (wvo, bvo).
    a = jnp.dot(g, wvo_ref[...], preferred_element_type=jnp.float32) + bvo_ref[...]

    # Gated concat stays in vregs (three lane-aligned 128-wide tiles placed
    # side by side), then one fused (384, 2) matmul replaces fc1->fc2->fc3.
    gated = jnp.concatenate(
        [x2d1_ref[...] * a, x2d2_ref[...] * a, x2d3_ref[...] * a], axis=-1)
    out = jnp.dot(gated, wc_ref[...],
                  preferred_element_type=jnp.float32) + bc_ref[...]
    out_ref[...] = out.astype(out_ref.dtype)


def init_params(key):
    """PyTorch-style (uniform +/- 1/sqrt(fan_in)) init.

    Weights are returned already transposed to (in_features, out_features);
    biases are (1, out_features) for clean broadcasting.
    """
    def lin(k, fan_in, fan_out):
        kw, kb = jax.random.split(k)
        bound = 1.0 / (fan_in ** 0.5)
        w = jax.random.uniform(kw, (fan_in, fan_out), jnp.float32, -bound, bound)
        b = jax.random.uniform(kb, (1, fan_out), jnp.float32, -bound, bound)
        return w, b

    ks = jax.random.split(key, 6)
    wa, ba = lin(ks[0], 512, 128)   # attention_layer
    wv, bv = lin(ks[1], 128, 128)   # MHA value projection (slice of in_proj)
    wo, bo = lin(ks[2], 128, 128)   # MHA out_proj
    w1, b1 = lin(ks[3], 384, 256)   # fc1
    w2, b2 = lin(ks[4], 256, 64)    # fc2
    w3, b3 = lin(ks[5], 64, 2)      # fc3
    return dict(wa=wa, ba=ba, wv=wv, bv=bv, wo=wo, bo=bo,
                w1=w1, b1=b1, w2=w2, b2=b2, w3=w3, b3=b3)


def fuse_params(p):
    """Offline algebraic fusion (exact up to f32 rounding; there are no
    activations/dropout between these Linears in the PyTorch forward):
       - v_proj . out_proj      -> (wvo, bvo)            (128, 128)
       - fc1 . fc2 . fc3        -> (wc, bc)              (384, 2)
    """
    wvo = p["wv"] @ p["wo"]
    bvo = p["bv"] @ p["wo"] + p["bo"]
    wc = p["w1"] @ p["w2"] @ p["w3"]
    bc = (p["b1"] @ p["w2"] + p["b2"]) @ p["w3"] + p["b3"]
    return dict(wa=p["wa"], ba=p["ba"], wvo=wvo, bvo=bvo, wc=wc, bc=bc)


def _round_up(n, m):
    return (n + m - 1) // m * m


def integrated_forward(x_2d_1, x_2d_2, x_2d_3, x_3d, fused, *, tb=1024):
    """Batch-gridded, pipelined forward.  `tb` is the max row tile."""
    B = x_3d.shape[0]
    # Large tiles amortize per-step overhead, but keep >=2 grid steps (when
    # B > 8) so v7x's two TensorCores both get work.  Always a multiple of 8.
    TB = max(8, min(_round_up(tb, 8), _round_up(pl.cdiv(B, 2), 8)))
    grid = (pl.cdiv(B, TB),)   # ragged last block: no host-side padding/copy

    row = lambda cols: pl.BlockSpec((TB, cols), lambda i: (i, 0))
    resident = lambda arr: pl.BlockSpec(arr.shape, lambda i: (0, 0))

    inputs = (x_3d, x_2d_1, x_2d_2, x_2d_3,
              fused["wa"], fused["ba"], fused["wvo"], fused["bvo"],
              fused["wc"], fused["bc"])
    in_specs = [row(512), row(128), row(128), row(128)] + \
               [resident(a) for a in inputs[4:]]

    # VMEM budget: double-buffered row tiles + (conservatively double-counted)
    # resident weights + margin for Mosaic internal scratch.  Clamp so it is
    # explicit on v5e (16 MiB default scope) yet far under v7x's 64 MiB.
    weight_bytes = 4 * sum(int(a.size) for a in inputs[4:])
    per_step_bytes = TB * (512 + 3 * 128 + 2) * 4
    vmem_limit = int(min(max(2 * per_step_bytes + 2 * weight_bytes + (4 << 20),
                             24 << 20), 48 << 20))

    cost = pl.CostEstimate(
        flops=B * (2 * 512 * 128 + 2 * 128 * 128 + 2 * 384 * 2),
        transcendentals=B * 128,
        bytes_accessed=4 * (B * (512 + 3 * 128 + 2)) + weight_bytes,
    )

    return pl.pallas_call(
        integrated_kernel,
        out_shape=jax.ShapeDtypeStruct((B, 2), jnp.float32),
        grid=grid,
        in_specs=in_specs,
        out_specs=pl.BlockSpec((TB, 2), lambda i: (i, 0)),
        compiler_params=pltpu.CompilerParams(
            dimension_semantics=("parallel",),   # 2 TCs on v7x; no-op elsewhere
            vmem_limit_bytes=vmem_limit),
        cost_estimate=cost,
    )(*inputs)


def reference_forward(x_2d_1, x_2d_2, x_2d_3, x_3d, p):
    """Pure-JAX reference using the UNfused parameters."""
    g = jax.nn.softmax(x_3d @ p["wa"] + p["ba"], axis=-1)
    a = (g @ p["wv"] + p["bv"]) @ p["wo"] + p["bo"]
    guided = jnp.concatenate([x_2d_1 * a, x_2d_2 * a, x_2d_3 * a], axis=1)
    h = guided @ p["w1"] + p["b1"]
    h = h @ p["w2"] + p["b2"]
    return h @ p["w3"] + p["b3"]


if __name__ == "__main__":
    key = jax.random.PRNGKey(0)
    k_params, k1, k2, k3, k4 = jax.random.split(key, 5)

    # B=136 exercises both the >=2-step cap (default tb -> TB=72, 2 ragged
    # steps) and a deeper grid (tb=64 -> 3 steps, ragged tail of 8 rows).
    B = 136
    params = init_params(k_params)
    fused = fuse_params(params)
    x_2d_1 = jax.random.normal(k1, (B, 128), jnp.float32)
    x_2d_2 = jax.random.normal(k2, (B, 128), jnp.float32)
    x_2d_3 = jax.random.normal(k3, (B, 128), jnp.float32)
    x_3d = jax.random.normal(k4, (B, 512), jnp.float32)

    out = integrated_forward(x_2d_1, x_2d_2, x_2d_3, x_3d, fused)          # default tile
    out_small = integrated_forward(x_2d_1, x_2d_2, x_2d_3, x_3d, fused, tb=64)
    out = jax.block_until_ready(out)
    out_small = jax.block_until_ready(out_small)

    ref = reference_forward(x_2d_1, x_2d_2, x_2d_3, x_3d, params)
    assert out.shape == (B, 2)
    assert jnp.allclose(out, ref, atol=1e-4, rtol=1e-4)
    assert jnp.allclose(out_small, ref, atol=1e-4, rtol=1e-4)

    print("KERNEL_OK")
</pallas_src>

<mosaic_0001>
module attributes {stable_mosaic.version = 11 : i64} {
  func.func @integrated_kernel(%arg0: i32, %arg1: memref<72x512xf32, #tpu.memory_space<vmem>>, %arg2: memref<72x128xf32, #tpu.memory_space<vmem>>, %arg3: memref<72x128xf32, #tpu.memory_space<vmem>>, %arg4: memref<72x128xf32, #tpu.memory_space<vmem>>, %arg5: memref<512x128xf32, #tpu.memory_space<vmem>>, %arg6: memref<1x128xf32, #tpu.memory_space<vmem>>, %arg7: memref<128x128xf32, #tpu.memory_space<vmem>>, %arg8: memref<1x128xf32, #tpu.memory_space<vmem>>, %arg9: memref<384x2xf32, #tpu.memory_space<vmem>>, %arg10: memref<1x2xf32, #tpu.memory_space<vmem>>, %arg11: memref<72x2xf32, #tpu.memory_space<vmem>>) attributes {dimension_semantics = [#tpu.dimension_semantics<parallel>], iteration_bounds = array<i64: 2>, scalar_prefetch = 0 : i64, scratch_operands = 0 : i64, tpu.core_type = #tpu.core_type<tc>, window_params = [{transform_indices = @transform_0, window_bounds = array<i64: 72, 512>}, {transform_indices = @transform_1, window_bounds = array<i64: 72, 128>}, {transform_indices = @transform_2, window_bounds = array<i64: 72, 128>}, {transform_indices = @transform_3, window_bounds = array<i64: 72, 128>}, {pipeline_mode = #tpu.pipeline_mode<synchronous>, transform_indices = @transform_4, window_bounds = array<i64: 512, 128>}, {pipeline_mode = #tpu.pipeline_mode<synchronous>, transform_indices = @transform_5, window_bounds = array<i64: 1, 128>}, {pipeline_mode = #tpu.pipeline_mode<synchronous>, transform_indices = @transform_6, window_bounds = array<i64: 128, 128>}, {pipeline_mode = #tpu.pipeline_mode<synchronous>, transform_indices = @transform_7, window_bounds = array<i64: 1, 128>}, {pipeline_mode = #tpu.pipeline_mode<synchronous>, transform_indices = @transform_8, window_bounds = array<i64: 384, 2>}, {pipeline_mode = #tpu.pipeline_mode<synchronous>, transform_indices = @transform_9, window_bounds = array<i64: 1, 2>}, {transform_indices = @transform_10, window_bounds = array<i64: 72, 2>}]} {
    %c0 = arith.constant 0 : index
    %c0_0 = arith.constant 0 : index
    %0 = vector.load %arg1[%c0, %c0_0] : memref<72x512xf32, #tpu.memory_space<vmem>>, vector<72x512xf32>
    %c0_1 = arith.constant 0 : index
    %c0_2 = arith.constant 0 : index
    %1 = vector.load %arg5[%c0_1, %c0_2] : memref<512x128xf32, #tpu.memory_space<vmem>>, vector<512x128xf32>
    %cst = arith.constant dense<0.000000e+00> : vector<72x128xf32>
    %2 = tpu.matmul %0, %1, %cst {dimension_numbers = #tpu.dot_dimension_numbers<[1], [0], [0], [1], [0, 0, 1, 1], [], []>} : vector<72x512xf32>, vector<512x128xf32>, vector<72x128xf32> -> vector<72x128xf32>
    %c0_3 = arith.constant 0 : index
    %c0_4 = arith.constant 0 : index
    %3 = vector.load %arg6[%c0_3, %c0_4] : memref<1x128xf32, #tpu.memory_space<vmem>>, vector<1x128xf32>
    %4 = vector.broadcast %3 : vector<1x128xf32> to vector<72x128xf32>
    %5 = arith.addf %2, %4 : vector<72x128xf32>
    %cst_5 = arith.constant dense<0xFF800000> : vector<72xf32>
    %6 = vector.multi_reduction <maximumf>, %5, %cst_5 [1] : vector<72x128xf32> to vector<72xf32>
    %7 = vector.shape_cast %6 : vector<72xf32> to vector<72x1xf32>
    %8 = vector.broadcast %7 : vector<72x1xf32> to vector<72x128xf32>
    %9 = arith.subf %5, %8 : vector<72x128xf32>
    %10 = math.exp %9 : vector<72x128xf32>
    %cst_6 = arith.constant dense<0.000000e+00> : vector<72xf32>
    %11 = vector.multi_reduction <add>, %10, %cst_6 [1] : vector<72x128xf32> to vector<72xf32>
    %12 = vector.shape_cast %11 : vector<72xf32> to vector<72x1xf32>
    %13 = tpu.reciprocal %12 : vector<72x1xf32> -> vector<72x1xf32>
    %14 = vector.broadcast %13 : vector<72x1xf32> to vector<72x128xf32>
    %15 = arith.mulf %10, %14 : vector<72x128xf32>
    %c0_7 = arith.constant 0 : index
    %c0_8 = arith.constant 0 : index
    %16 = vector.load %arg7[%c0_7, %c0_8] : memref<128x128xf32, #tpu.memory_space<vmem>>, vector<128x128xf32>
    %cst_9 = arith.constant dense<0.000000e+00> : vector<72x128xf32>
    %17 = tpu.matmul %15, %16, %cst_9 {dimension_numbers = #tpu.dot_dimension_numbers<[1], [0], [0], [1], [0, 0, 1, 1], [], []>} : vector<72x128xf32>, vector<128x128xf32>, vector<72x128xf32> -> vector<72x128xf32>
    %c0_10 = arith.constant 0 : index
    %c0_11 = arith.constant 0 : index
    %18 = vector.load %arg8[%c0_10, %c0_11] : memref<1x128xf32, #tpu.memory_space<vmem>>, vector<1x128xf32>
    %19 = vector.broadcast %18 : vector<1x128xf32> to vector<72x128xf32>
    %20 = arith.addf %17, %19 : vector<72x128xf32>
    %c0_12 = arith.constant 0 : index
    %c0_13 = arith.constant 0 : index
    %21 = vector.load %arg2[%c0_12, %c0_13] : memref<72x128xf32, #tpu.memory_space<vmem>>, vector<72x128xf32>
    %22 = arith.mulf %21, %20 : vector<72x128xf32>
    %c0_14 = arith.constant 0 : index
    %c0_15 = arith.constant 0 : index
    %23 = vector.load %arg3[%c0_14, %c0_15] : memref<72x128xf32, #tpu.memory_space<vmem>>, vector<72x128xf32>
    %24 = arith.mulf %23, %20 : vector<72x128xf32>
    %c0_16 = arith.constant 0 : index
    %c0_17 = arith.constant 0 : index
    %25 = vector.load %arg4[%c0_16, %c0_17] : memref<72x128xf32, #tpu.memory_space<vmem>>, vector<72x128xf32>
    %26 = arith.mulf %25, %20 : vector<72x128xf32>
    %27 = tpu.concatenate %22, %24, %26 in 1 : vector<72x128xf32>, vector<72x128xf32>, vector<72x128xf32> -> vector<72x384xf32>
    %c0_18 = arith.constant 0 : index
    %c0_19 = arith.constant 0 : index
    %28 = vector.load %arg9[%c0_18, %c0_19] : memref<384x2xf32, #tpu.memory_space<vmem>>, vector<384x2xf32>
    %cst_20 = arith.constant dense<0.000000e+00> : vector<72x2xf32>
    %29 = tpu.matmul %27, %28, %cst_20 {dimension_numbers = #tpu.dot_dimension_numbers<[1], [0], [0], [1], [0, 0, 1, 1], [], []>} : vector<72x384xf32>, vector<384x2xf32>, vector<72x2xf32> -> vector<72x2xf32>
    %c0_21 = arith.constant 0 : index
    %c0_22 = arith.constant 0 : index
    %30 = vector.load %arg10[%c0_21, %c0_22] : memref<1x2xf32, #tpu.memory_space<vmem>>, vector<1x2xf32>
    %31 = vector.broadcast %30 : vector<1x2xf32> to vector<72x2xf32>
    %32 = arith.addf %29, %31 : vector<72x2xf32>
    %c0_23 = arith.constant 0 : index
    %c0_24 = arith.constant 0 : index
    %33 = vector.load %arg11[%c0_23, %c0_24] : memref<72x2xf32, #tpu.memory_space<vmem>>, vector<72x2xf32>
    tpu.vector_store %arg11[%c0_23, %c0_24], %32 {strides = array<i32>} : memref<72x2xf32, #tpu.memory_space<vmem>>, vector<72x2xf32>,
    return
  }
  func.func @transform_0(%arg0: i32) -> (i32, i32) {
    %c0_i32 = arith.constant 0 : i32
    %c0_i32_0 = arith.constant 0 : i32
    return %arg0, %c0_i32 : i32, i32
  }
  func.func @transform_1(%arg0: i32) -> (i32, i32) {
    %c0_i32 = arith.constant 0 : i32
    %c0_i32_0 = arith.constant 0 : i32
    return %arg0, %c0_i32 : i32, i32
  }
  func.func @transform_2(%arg0: i32) -> (i32, i32) {
    %c0_i32 = arith.constant 0 : i32
    %c0_i32_0 = arith.constant 0 : i32
    return %arg0, %c0_i32 : i32, i32
  }
  func.func @transform_3(%arg0: i32) -> (i32, i32) {
    %c0_i32 = arith.constant 0 : i32
    %c0_i32_0 = arith.constant 0 : i32
    return %arg0, %c0_i32 : i32, i32
  }
  func.func @transform_4(%arg0: i32) -> (i32, i32) {
    %c0_i32 = arith.constant 0 : i32
    %c0_i32_0 = arith.constant 0 : i32
    %c0_i32_1 = arith.constant 0 : i32
    return %c0_i32, %c0_i32_0 : i32, i32
  }
  func.func @transform_5(%arg0: i32) -> (i32, i32) {
    %c0_i32 = arith.constant 0 : i32
    %c0_i32_0 = arith.constant 0 : i32
    %c0_i32_1 = arith.constant 0 : i32
    return %c0_i32, %c0_i32_0 : i32, i32
  }
  func.func @transform_6(%arg0: i32) -> (i32, i32) {
    %c0_i32 = arith.constant 0 : i32
    %c0_i32_0 = arith.constant 0 : i32
    %c0_i32_1 = arith.constant 0 : i32
    return %c0_i32, %c0_i32_0 : i32, i32
  }
  func.func @transform_7(%arg0: i32) -> (i32, i32) {
    %c0_i32 = arith.constant 0 : i32
    %c0_i32_0 = arith.constant 0 : i32
    %c0_i32_1 = arith.constant 0 : i32
    return %c0_i32, %c0_i32_0 : i32, i32
  }
  func.func @transform_8(%arg0: i32) -> (i32, i32) {
    %c0_i32 = arith.constant 0 : i32
    %c0_i32_0 = arith.constant 0 : i32
    %c0_i32_1 = arith.constant 0 : i32
    return %c0_i32, %c0_i32_0 : i32, i32
  }
  func.func @transform_9(%arg0: i32) -> (i32, i32) {
    %c0_i32 = arith.constant 0 : i32
    %c0_i32_0 = arith.constant 0 : i32
    %c0_i32_1 = arith.constant 0 : i32
    return %c0_i32, %c0_i32_0 : i32, i32
  }
  func.func @transform_10(%arg0: i32) -> (i32, i32) {
    %c0_i32 = arith.constant 0 : i32
    %c0_i32_0 = arith.constant 0 : i32
    return %arg0, %c0_i32 : i32, i32
  }
}

</mosaic_0001>

<bundles_post_ra>
// kernel: tpu_custom_call.1
= control target key start
LH: loop header
LB: loop body
LE: loop exit
PB: predicated region body
PF: predicated region fallthrough
CT: control target
= control target key end

     0   :  { %s3463_s0 = inlined_call_operand.hbm [shape: f32[136,512], index: 0, kind: input, shape index: {}]   ;;  %s3464_s1 = inlined_call_operand.vmem [shape: f32[136,128], index: 1, kind: input, shape index: {}]   ;;  %s3465_s2 = inlined_call_operand.vmem [shape: f32[136,128], index: 2, kind: input, shape index: {}]   ;;  %s3466_s3 = inlined_call_operand.hbm [shape: f32[136,128], index: 3, kind: input, shape index: {}]   ;;  %s3467_s4 = inlined_call_operand.hbm [shape: f32[512,128], index: 4, kind: input, shape index: {}]   ;;  %s3468_s5 = inlined_call_operand.vmem [shape: f32[1,128], index: 5, kind: input, shape index: {}]   ;;  %s3469_s6 = inlined_call_operand.vmem [shape: f32[128,128], index: 6, kind: input, shape index: {}]   ;;  %s3470_s7 = inlined_call_operand.vmem [shape: f32[1,128], index: 7, kind: input, shape index: {}]   ;;  %s3471_s8 = inlined_call_operand.vmem [shape: f32[384,2], index: 8, kind: input, shape index: {}]   ;;  %s3472_s9 = inlined_call_operand.vmem [shape: f32[1,2], index: 9, kind: input, shape index: {}]   ;;  %s3473_s10 = inlined_call_operand.vmem [shape: f32[136,2], index: 10, kind: output, shape index: {}]  }
   0x1   :  { %3479 = sst [smem:[#allocation13_spill]] %s3463_s0 }
   0x2   :  { %3480 = sst [smem:[#allocation14_spill]] %s3467_s4 }
   0x3   :  { %15 = vsyncpa [#allocation3], 0 }
   0x4   :  { %17 = vsyncpa [#allocation3 + $0x1], 0 }
   0x5   :  { %18 = vsyncpa [#allocation5], 0 }
   0x6   :  { %20 = vsyncpa [#allocation5 + $0x1], 0  ;;  %s2706_s13 = smov 0   ;;  %s2708_s14 = smov 0  }
   0x7   :  { %s2710_s15 = smov 0   ;;  %s2712_s16 = smov 0  }
   0x8 LB: > { %s2725_s17 = sadd.s32 4294967295, %s2605_s16   ;;  %s2728_s18 = sadd.s32 1, %s2605_s16   ;;  %s2605_s16 = sphi %s2712_s16, %s3500_s16   ;;  %s2601_s15 = sphi %s2710_s15, %s3504_s15   ;;  %s2597_s14 = sphi %s2708_s14, %s3503_s14   ;;  %s2593_s13 = sphi %s2706_s13, %s3502_s13  }
   0x9   : > { %3481 = sst [smem:[#allocation11_spill]] %s2728_s18  ;;  %s30_s19 = ssub.s32 %s2605_s16, %s2728_s18 }
   0xa   : > { %s33_s20 = sadd.s32 1, %s2601_s15  ;;  %p31_p0 = scmp.eq.s32.totalorder %s30_s19, 0 }
   0xb   : > { %p40_p1 = scmp.ne.s32.totalorder %s2601_s15, %s2597_s14  ;;  %p41_p2 = scmp.eq.s32.totalorder %s2605_s16, 0 }
   0xc   : > { %p46_p3 = scmp.ne.s32.totalorder %s2597_s14, %s2593_s13  ;;  %p3474_p5 = scmp.eq.s32.totalorder %s2725_s17, 0 }
   0xd   : > { %s2738_s21 = scalar_select %p31_p0, %s2601_s15, %s33_s20  }
   0xe   : > { %p2740_p4 = por %p41_p2, %p40_p1  ;;  %p274_p6 = scmp.eq.s32.totalorder %s2725_s17, 1 }
   0xf   : > { %3482 = sst [smem:[#allocation12_spill]] %s2738_s21  ;;  %p1739_p7 = scmp.ge.s32.totalorder %s2605_s16, 1 }
  0x10   : > { %s3483_s22 = scalar_select %p2740_p4, 1, 0 }
  0x11   : > { %p2749_p8 = por %p3474_p5, %p46_p3  ;;  %p287_p9 = scmp.lt.s32.totalorder %s2605_s16, 3 }
  0x12   : > { %p2754_p10 = por %p274_p6, %p40_p1  ;;  %s2639_s26 = smov [#allocation6]  }
  0x13   : > { %s3484_s23 = scalar_select %p2749_p8, 1, 0 }
  0x14   : > { %s3485_s24 = scalar_select %p2754_p10, 1, 0 }
  0x15   : > { %p2758_p11 = pnand %p1739_p7, %p287_p9  ;;  %s299_s27 = sshll.u32 %s2639_s26, 4  ;;  %s300_s27 = int_to_ptr.vmem [resolvable:$true] %s299_s27 }
  0x16   : > { %s3488_s4 = sld [smem:[#allocation14_spill]] }
  0x17   : > { %s3486_s25 = scalar_select %p2758_p11, 1, 0 }
  0x18   : > { %p2294_p12 = pneg %p2758_p11 }
  0x1a   : > { %p2766_p13 = pnand %p2294_p12, %p3474_p5 }
  0x1c   : > { %s2447_s11 = scalar_lea.hbm %s3488_s4, 8192  ;;  %p2449_p1 = pneg %p2766_p13 }
  0x1d   : > { %p2448_p0 = scmp.ne.s32.totalorder %s3488_s4, %s2447_s11  ;;  %p2454_p6 = scmp.lt.u32.totalorder %s2447_s11, %s3488_s4 }
  0x1f   : > { %p2450_p2 = pnand %p2449_p1, %p2448_p0 }
  0x21   : > { %p2451_p3 = pneg %p2450_p2 }
  0x23   : > { %p2456_p7 = pnand %p2454_p6, %p2451_p3 }
  0x25   : > { %2459 = shalt.err (!%p2456_p7)
}
  0x26   : > { %s2460_s26 = scalar_lea.vmem %s300_s27, 8192  ;;  %p2468_p10 = scmp.lt.s32.totalorder %s300_s27, %s300_s27 }
  0x27   : > { %p2461_p9 = scmp.ne.s32.totalorder %s300_s27, %s2460_s26  ;;  %p2469_p8 = scmp.lt.s32.totalorder %s2460_s26, %s2460_s26 }
  0x29   : > { %p2463_p12 = pnand %p2461_p9, %p2449_p1  ;;  %p2470_p11 = por %p2469_p8, %p2468_p10 }
  0x2b   : > { %p2464_p5 = pneg %p2463_p12 }
  0x2d   : > { %p2471_p4 = pnand %p2470_p11, %p2464_p5 }
  0x2f   : > { %2474 = shalt.err (!%p2471_p4)
}
  0x30   : > { %s2640_s29 = smov 128   ;;  %s2641_s30 = smov 8  }
  0x31   : > { %2297 = dma.hbm_to_vmem [thread:$0]  (!%p2766_p13), %s3488_s4, 8192, %s300_s27, [#allocation5], %s2640_s29, %s2640_s29, %s2641_s30  }
  0x32   : > { %p1741_p0 = scmp.ge.s32.totalorder %s2605_s16, 2 }
  0x33   : > { %p3489_p2 = scmp.ne.s32.totalorder (!%p1741_p0), %s3483_s22, 0 }
  0x34   : > { %324 = sbr.rel (%p1741_p0) target bundleno = 136 (0x88), region = 40 }
  0x3b   : > { %327 = sbr.rel (!%p3489_p2) target bundleno = 99 (0x63), region = 44  ;;  %s328_s11 = sand.u32 (%p3489_p2), 1, %s2601_s15  }
  0x3c   : > { %s333_s19 = smul.u32 (%p3489_p2), 9, %s2605_s16  ;;  %s2794_s12 = scalar_lea.sflag (%p3489_p2), [#allocation3], %s328_s11 }
  0x3d   : > { %s2284_s20 = smul.u32 (%p3489_p2), 288, %s328_s11 }
  0x3e   : > { %s334_s26 = ssub.s32 (%p3489_p2), 17, %s333_s19 }
  0x3f   : > { %p335_p4 = scmp.lt.s32.totalorder (%p3489_p2), %s334_s26, 9  ;;  %s332_s27 = scalar_lea.vmem (%p3489_p2), [#allocation2], %s2284_s20 }
  0x42   : > { %s3506_s26 = smov (!%p335_p4, %s334_s26), 9 }
  0x43   : > { %s2791_s21 = sshll.u32 %s3506_s26, 9 }
  0x44   : > { %s340_s28 = ssub.s32 4608, %s2791_s21 }
  0x45   : > { %341 = vsyncadd %s2794_s12, %s340_s28  ;;  %p1744_p5 = scmp.ne.s32.totalorder %s2791_s21, 0  ;;  %s1778_s29 = smul.u32 4608, %s2605_s16 }
  0x46   : > { %s347_s30 = sshll.u32 %s332_s27, 4  ;;  %s3490_s0 = sld [smem:[#allocation13_spill]]  ;;  %s2804_s30 = int_to_ptr.vmem [resolvable:$true] %s347_s30 }
  0x4c   : > { %s2802_s4 = scalar_lea.hbm %s3490_s0, %s1778_s29  ;;  %s2479_s28 = scalar_lea.hbm %s3490_s0, 8704 }
  0x4d   : > { %s2475_s11 = scalar_lea.hbm %s2802_s4, %s2791_s21  ;;  %p2480_p13 = scmp.lt.u32.totalorder %s2802_s4, %s3490_s0 }
  0x4e   : > { %p2476_p8 = scmp.ne.s32.totalorder %s2802_s4, %s2475_s11  ;;  %p2481_p1 = scmp.lt.u32.totalorder %s2479_s28, %s2475_s11 }
  0x4f   : > { %p2483_p6 = scmp.lt.u32.totalorder %s2475_s11, %s2802_s4 }
  0x50   : > { %p2477_p10 = pnand %p2476_p8, %p1744_p5  ;;  %p2482_p3 = por %p2481_p1, %p2480_p13 }
  0x52   : > { %p2478_p11 = pneg %p2477_p10  ;;  %p2484_p7 = por %p2483_p6, %p2482_p3 }
  0x54   : > { %p2485_p9 = pnand %p2484_p7, %p2478_p11 }
  0x56   : > { %2488 = shalt.err (!%p2485_p9)
}
  0x57   : > { %s2489_s29 = scalar_lea.vmem %s2804_s30, %s2791_s21  ;;  %s2642_s13 = smov [#allocation2]  }
  0x58   : > { %p2490_p12 = scmp.ne.s32.totalorder %s2804_s30, %s2489_s29  ;;  %s2493_s19 = sshll.u32 %s2642_s13, 4  ;;  %s2494_s19 = int_to_ptr.vmem [resolvable:$false] %s2493_s19 }
  0x59   : > { %s2495_s18 = scalar_lea.vmem %s2494_s19, 9216  ;;  %p2496_p4 = scmp.lt.s32.totalorder %s2804_s30, %s2494_s19 }
  0x5a   : > { %p2491_p0 = pnand %p2490_p12, %p1744_p5  ;;  %p2497_p8 = scmp.lt.s32.totalorder %s2495_s18, %s2489_s29 }
  0x5c   : > { %p2492_p2 = pneg %p2491_p0  ;;  %p2498_p10 = por %p2497_p8, %p2496_p4 }
  0x5e   : > { %p2499_p13 = pnand %p2498_p10, %p2492_p2 }
  0x60   : > { %2502 = shalt.err (!%p2499_p13)
}
  0x61   : > { %s2643_s11 = smov 512   ;;  %s2644_s20 = smov 32  }
  0x62   : > { %353 = dma.hbm_to_vmem [thread:$0]  (%p1744_p5), %s2802_s4, %s2791_s21, %s2804_s30, %s2794_s12, %s2643_s11, %s2643_s11, %s2644_s20  }
  0x63 PF: > { %p3491_p11 = scmp.ne.s32.totalorder %s3483_s22, 0 }
  0x64   : > { %s391_s26 = sand.u32 (%p3491_p11), 1, %s2605_s16   ;;  %s393_s28 = sand.u32 (%p3491_p11), 1, %s2601_s15  }
  0x65   : > { %390 = sbr.rel (!%p3491_p11) target bundleno = 136 (0x88), region = 56  ;;  %s2839_s0 = scalar_lea.sflag (%p3491_p11), [#allocation5], %s391_s26 }
  0x66   : > { %s2285_s27 = smul.u32 (%p3491_p11), 72, %s393_s28 }
  0x67   : > { %s396_s29 = smul.u32 (%p3491_p11), 9, %s2605_s16 }
  0x68   : > { %s395_s4 = scalar_lea.vmem (%p3491_p11), [#allocation4], %s2285_s27 }
  0x69   : > { %s397_s13 = ssub.s32 (%p3491_p11), 17, %s396_s29 }
  0x6a   : > { %p398_p1 = scmp.lt.s32.totalorder (%p3491_p11), %s397_s13, 9 }
  0x6c   : > { %s3508_s13 = smov (!%p398_p1, %s397_s13), 9 }
  0x6d   : > { %s2836_s19 = sshll.u32 %s3508_s13, 7 }
  0x6e   : > { %s402_s18 = ssub.s32 1152, %s2836_s19 }
  0x6f   : > { %403 = vsyncadd %s2839_s0, %s402_s18  ;;  %p1750_p5 = scmp.ne.s32.totalorder %s2836_s19, 0  ;;  %s1776_s21 = smul.u32 1152, %s2605_s16 }
  0x70   : > { %s408_s22 = sshll.u32 %s395_s4, 4  ;;  %s2507_s16 = scalar_lea.hbm %s3466_s3, 2176  ;;  %s2849_s22 = int_to_ptr.vmem [resolvable:$true] %s408_s22 }
  0x71   : > { %s2847_s11 = scalar_lea.hbm %s3466_s3, %s1776_s21 }
  0x72   : > { %s2503_s20 = scalar_lea.hbm %s2847_s11, %s2836_s19  ;;  %p2508_p9 = scmp.lt.u32.totalorder %s2847_s11, %s3466_s3 }
  0x73   : > { %p2504_p3 = scmp.ne.s32.totalorder %s2847_s11, %s2503_s20  ;;  %p2509_p12 = scmp.lt.u32.totalorder %s2507_s16, %s2503_s20 }
  0x74   : > { %p2511_p2 = scmp.lt.u32.totalorder %s2503_s20, %s2847_s11 }
  0x75   : > { %p2505_p6 = pnand %p2504_p3, %p1750_p5  ;;  %p2510_p0 = por %p2509_p12, %p2508_p9 }
  0x77   : > { %p2506_p7 = pneg %p2505_p6  ;;  %p2512_p4 = por %p2511_p2, %p2510_p0 }
  0x79   : > { %p2513_p8 = pnand %p2512_p4, %p2506_p7 }
  0x7b   : > { %2516 = shalt.err (!%p2513_p8)
}
  0x7c   : > { %s2517_s13 = scalar_lea.vmem %s2849_s22, %s2836_s19  ;;  %s2645_s18 = smov [#allocation4]  }
  0x7d   : > { %p2518_p10 = scmp.ne.s32.totalorder %s2849_s22, %s2517_s13  ;;  %s2521_s4 = sshll.u32 %s2645_s18, 4  ;;  %s2522_s4 = int_to_ptr.vmem [resolvable:$false] %s2521_s4 }
  0x7e   : > { %s2523_s21 = scalar_lea.vmem %s2522_s4, 2304  ;;  %p2524_p1 = scmp.lt.s32.totalorder %s2849_s22, %s2522_s4 }
  0x7f   : > { %p2519_p13 = pnand %p2518_p10, %p1750_p5  ;;  %p2525_p3 = scmp.lt.s32.totalorder %s2523_s21, %s2517_s13 }
  0x81   : > { %p2520_p11 = pneg %p2519_p13  ;;  %p2526_p6 = por %p2525_p3, %p2524_p1 }
  0x83   : > { %p2527_p9 = pnand %p2526_p6, %p2520_p11 }
  0x85   : > { %2530 = shalt.err (!%p2527_p9)
}
  0x86   : > { %s2646_s12 = smov 128   ;;  %s2647_s30 = smov 8  }
  0x87   : > { %414 = dma.hbm_to_vmem [thread:$0]  (%p1750_p5), %s2847_s11, %s2836_s19, %s2849_s22, %s2839_s0, %s2646_s12, %s2646_s12, %s2647_s30  }
  0x88 PF: > { %p3492_p7 = scmp.ne.s32.totalorder %s3486_s25, 0 }
  0x89   : > { %s2879_s20 = sand.u32 (!%p3492_p7), 1, %s2597_s14   ;;  %p3493_p12 = scmp.ne.s32.totalorder (!%p3492_p7), %s3484_s23, 0 }
  0x8a   : > { %420 = sbr.rel (%p3492_p7) target bundleno = 1260 (0x4ec), region = 60  ;;  %s423_s28 = scalar_lea.sflag (!%p3492_p7), [#allocation3], %s2879_s20 }
  0x8b   : > { %s2286_s26 = smul.u32 (!%p3492_p7), 288, %s2879_s20 }
  0x8d   : > { %s2883_s16 = scalar_lea.vmem (!%p3492_p7), [#allocation2], %s2286_s26 }
  0x91   : > { %2580 = dma.done.wait (%p3493_p12), %s423_s28, 4608  }
  0x92   : > { %2582 = vsyncadd (%p3493_p12), %s423_s28, 4294962688  ;;  %s431_s0 = sand.u32 1, %s2725_s17   ;;  %s2287_s25 = smul.u32 72, %s2879_s20 }
  0x93   : > { %s432_s19 = scalar_lea.sflag [#allocation5], %s431_s0 }
  0x94   : > { %s2893_s22 = scalar_lea.vmem [#allocation4], %s2287_s25 }
  0x95   : > { %2584 = dma.done.wait (%p3493_p12), %s432_s19, 1152  }
  0x96   : > { %2586 = vsyncadd (%p3493_p12), %s432_s19, 4294966144  ;;  %p3494_p5 = scmp.eq.s32.totalorder %s2725_s17, 0 }
  0x98   : > { %2588 = dma.done.wait (%p3494_p5), [#allocation5], 8192   ;;  %p3495_p0 = pmov %p3494_p5 }
  0x99   : > { %v594_v0 = vld [vmem:[#allocation6 + $0x80] sm:$0xff]  ;;  %v595_v1 = vld [vmem:[#allocation6 + $0x88] sm:$0xff]  ;;  %v596_v11 = vld [vmem:[#allocation6 + $0x90] sm:$0xff]  ;;  %vm2649_vm0 = vmmov 0   ;;  %s3279_s26 = smul.u32 9, %s2725_s17  ;;  %vm1412_vm1 = vcmask 15360  }
  0x9a   : > { %2590 = vsyncadd (%p3495_p0), [#allocation5], 4294959104  ;;  %v578_v2 = vld [vmem:[#allocation6] sm:$0xff]  ;;  %v2124_v3 = vpack.c.bf16 %v595_v1, %v594_v0  ;;  %v579_v4 = vld [vmem:[#allocation6 + $0x8] sm:$0xff]  ;;  %p3496_p4 = scmp.ne.s32.totalorder %s3485_s24, 0 }
  0x9b   : > { %v626_v5 = vld [vmem:[#allocation6 + $0x180] sm:$0xff]  ;;  %v627_v6 = vld [vmem:[#allocation6 + $0x188] sm:$0xff]  ;;  %v2126_v7 = vpack.c.bf16 %v579_v4, %v578_v2  ;;  %v597_v13 = vld [vmem:[#allocation6 + $0x98] sm:$0xff]  ;;  %p509_p2 = scmp.lt.s32.totalorder %s3279_s26, 16  ;;  %s1430_s20 = ssub.s32 (%p3496_p4), 17, %s3279_s26 }
  0x9c   : > { %v2156_v8 = vpack.c.bf16 %v627_v6, %v626_v5  ;;  %v610_v9 = vld [vmem:[#allocation6 + $0x100] sm:$0xff]  ;;  %v611_v10 = vld [vmem:[#allocation6 + $0x108] sm:$0xff]  ;;  %2125 = vmatprep.subr.bf16.mxu0 %v2124_v3  ;;  %v580_v14 = vld [vmem:[#allocation6 + $0x10] sm:$0xff]  ;;  %v2128_v16 = vpack.c.bf16 %v597_v13, %v596_v11  ;;  %p1431_p8 = scmp.lt.s32.totalorder (%p3496_p4), %s1430_s20, 9 }
  0x9d   : > { %v2158_v12 = vpack.c.bf16 %v611_v10, %v610_v9  ;;  %v581_v15 = vld [vmem:[#allocation6 + $0x18] sm:$0xff]  ;;  %2127 = vmatpush3.bf16.msra.mxu0 %v2126_v7  ;;  %v628_v18 = vld [vmem:[#allocation6 + $0x190] sm:$0xff]  ;;  %v598_v23 = vld [vmem:[#allocation6 + $0xa0] sm:$0xff]  ;;  %s510_s28 = scalar_select %p509_p2, %s3279_s26, 16 }
  0x9e   : > { %2157 = vmatprep.subr.bf16.mxu1 %v2156_v8  ;;  %v2130_v17 = vpack.c.bf16 %v581_v15, %v580_v14  ;;  %v629_v19 = vld [vmem:[#allocation6 + $0x198] sm:$0xff]  ;;  %v612_v20 = vld [vmem:[#allocation6 + $0x110] sm:$0xff]  ;;  %v599_v24 = vld [vmem:[#allocation6 + $0xa8] sm:$0xff]  ;;  %2129 = vmatprep.subr.bf16.mxu0 %v2128_v16 }
  0x9f   : > { %2159 = vmatpush3.bf16.msra.mxu1 %v2158_v12  ;;  %v2160_v21 = vpack.c.bf16 %v629_v19, %v628_v18  ;;  %v613_v22 = vld [vmem:[#allocation6 + $0x118] sm:$0xff]  ;;  %v2132_v26 = vpack.c.bf16 %v599_v24, %v598_v23  ;;  %v582_v27 = vld [vmem:[#allocation6 + $0x20] sm:$0xff]  ;;  %v583_v28 = vld [vmem:[#allocation6 + $0x28] sm:$0xff] }
  0xa0   : > { %v2162_v25 = vpack.c.bf16 %v613_v22, %v612_v20  ;;  %v630_v29 = vld [vmem:[#allocation6 + $0x1a0] sm:$0xff]  ;;  %v631_v30 = vld [vmem:[#allocation6 + $0x1a8] sm:$0xff]  ;;  %v2134_v33 = vpack.c.bf16 %v583_v28, %v582_v27  ;;  %v600_v35 = vld [vmem:[#allocation6 + $0xb0] sm:$0xff] }
  0xa1   : > { %2161 = vmatprep.subr.bf16.mxu1 %v2160_v21  ;;  %v614_v31 = vld [vmem:[#allocation6 + $0x120] sm:$0xff]  ;;  %v615_v32 = vld [vmem:[#allocation6 + $0x128] sm:$0xff]  ;;  %2131 = vmatpush3.bf16.msra.mxu0 %v2130_v17  ;;  %v2164_v34 = vpack.c.bf16 %v631_v30, %v630_v29  ;;  %v601_v36 = vld [vmem:[#allocation6 + $0xb8] sm:$0xff] }
  0xa2   : > { %v584_v37 = vld [vmem:[#allocation6 + $0x30] sm:$0xff]  ;;  %2133 = vmatprep.subr.bf16.mxu0 %v2132_v26  ;;  %v2166_v38 = vpack.c.bf16 %v615_v32, %v614_v31  ;;  %v2136_v39 = vpack.c.bf16 %v601_v36, %v600_v35  ;;  %v585_v40 = vld [vmem:[#allocation6 + $0x38] sm:$0xff]  ;;  %v602_v46 = vld [vmem:[#allocation6 + $0xc0] sm:$0xff] }
  0xa3   : > { %2163 = vmatpush3.bf16.msra.mxu1 %v2162_v25  ;;  %v632_v41 = vld [vmem:[#allocation6 + $0x1b0] sm:$0xff]  ;;  %v633_v42 = vld [vmem:[#allocation6 + $0x1b8] sm:$0xff]  ;;  %v603_v47 = vld [vmem:[#allocation6 + $0xc8] sm:$0xff]  ;;  %v2138_v48 = vpack.c.bf16 %v585_v40, %v584_v37 }
  0xa4   : > { %2165 = vmatprep.subr.bf16.mxu1 %v2164_v34  ;;  %v2168_v43 = vpack.c.bf16 %v633_v42, %v632_v41  ;;  %v616_v44 = vld [vmem:[#allocation6 + $0x130] sm:$0xff]  ;;  %v617_v45 = vld [vmem:[#allocation6 + $0x138] sm:$0xff]  ;;  %v634_v49 = vld [vmem:[#allocation6 + $0x1c0] sm:$0xff]  ;;  %v2140_v52 = vpack.c.bf16 %v603_v47, %v602_v46 }
  0xa5   : > { %2135 = vmatpush3.bf16.msra.mxu0 %v2134_v33  ;;  %v635_v50 = vld [vmem:[#allocation6 + $0x1c8] sm:$0xff]  ;;  %v2170_v51 = vpack.c.bf16 %v617_v45, %v616_v44  ;;  %v586_v53 = vld [vmem:[#allocation6 + $0x40] sm:$0xff]  ;;  %v604_v58 = vld [vmem:[#allocation6 + $0xd0] sm:$0xff] }
  0xa6   : > { %2137 = vmatprep.subr.bf16.mxu0 %v2136_v39  ;;  %v587_v54 = vld [vmem:[#allocation6 + $0x48] sm:$0xff]  ;;  %v618_v55 = vld [vmem:[#allocation6 + $0x140] sm:$0xff]  ;;  %v2172_v56 = vpack.c.bf16 %v635_v50, %v634_v49  ;;  %v605_v59 = vld [vmem:[#allocation6 + $0xd8] sm:$0xff] }
  0xa7   : > { %2167 = vmatpush3.bf16.msra.mxu1 %v2166_v38  ;;  %v619_v57 = vld [vmem:[#allocation6 + $0x148] sm:$0xff]  ;;  %v636_v60 = vld [vmem:[#allocation6 + $0x1d0] sm:$0xff]  ;;  %v637_v61 = vld [vmem:[#allocation6 + $0x1d8] sm:$0xff]  ;;  %v2142_v62 = vpack.c.bf16 %v587_v54, %v586_v53  ;;  %v2144_v0 = vpack.c.bf16 %v605_v59, %v604_v58 }
  0xa8   : > { %2169 = vmatprep.subr.bf16.mxu1 %v2168_v43  ;;  %v2174_v63 = vpack.c.bf16 %v619_v57, %v618_v55  ;;  %v588_v1 = vld [vmem:[#allocation6 + $0x50] sm:$0xff]  ;;  %v589_v2 = vld [vmem:[#allocation6 + $0x58] sm:$0xff]  ;;  %v2176_v4 = vpack.c.bf16 %v637_v61, %v636_v60  ;;  %v606_v6 = vld [vmem:[#allocation6 + $0xe0] sm:$0xff] }
  0xa9   : > { %2139 = vmatpush3.bf16.msra.mxu0 %v2138_v48  ;;  %v620_v3 = vld [vmem:[#allocation6 + $0x150] sm:$0xff]  ;;  %v621_v5 = vld [vmem:[#allocation6 + $0x158] sm:$0xff]  ;;  %v607_v7 = vld [vmem:[#allocation6 + $0xe8] sm:$0xff]  ;;  %v2146_v10 = vpack.c.bf16 %v589_v2, %v588_v1 }
  0xaa   : > { %2141 = vmatprep.subr.bf16.mxu0 %v2140_v52  ;;  %v638_v8 = vld [vmem:[#allocation6 + $0x1e0] sm:$0xff]  ;;  %v639_v9 = vld [vmem:[#allocation6 + $0x1e8] sm:$0xff]  ;;  %v2178_v13 = vpack.c.bf16 %v621_v5, %v620_v3  ;;  %v2148_v14 = vpack.c.bf16 %v607_v7, %v606_v6  ;;  %v543_v17 = vld [vmem:[%s2883_s16 + $0x8] sm:$0xff] }
  0xab   : > { %2171 = vmatpush3.bf16.msra.mxu1 %v2170_v51  ;;  %v590_v11 = vld [vmem:[#allocation6 + $0x60] sm:$0xff]  ;;  %v591_v12 = vld [vmem:[#allocation6 + $0x68] sm:$0xff]  ;;  %v2180_v18 = vpack.c.bf16 %v639_v9, %v638_v8  ;;  %v608_v19 = vld [vmem:[#allocation6 + $0xf0] sm:$0xff]  ;;  %713 = vmatprep.mubr.f32.mxu0 %v543_v17 }
  0xac   : > { %2173 = vmatprep.subr.bf16.mxu1 %v2172_v56  ;;  %v622_v15 = vld [vmem:[#allocation6 + $0x160] sm:$0xff]  ;;  %v623_v16 = vld [vmem:[#allocation6 + $0x168] sm:$0xff]  ;;  %v609_v20 = vld [vmem:[#allocation6 + $0xf8] sm:$0xff]  ;;  %v2150_v24 = vpack.c.bf16 %v591_v12, %v590_v11 }
  0xad   : > { %2143 = vmatpush3.bf16.msra.mxu0 %v2142_v62  ;;  %v545_v21 = vld [vmem:[%s2883_s16 + $0x18] sm:$0xff]  ;;  %v640_v22 = vld [vmem:[#allocation6 + $0x1f0] sm:$0xff]  ;;  %v641_v23 = vld [vmem:[#allocation6 + $0x1f8] sm:$0xff]  ;;  %v2182_v25 = vpack.c.bf16 %v623_v16, %v622_v15  ;;  %v2152_v26 = vpack.c.bf16 %v609_v20, %v608_v19 }
  0xae   : > { %2145 = vmatprep.subr.bf16.mxu0 %v2144_v0  ;;  %823 = vmatprep.mubr.f32.mxu1 %v545_v21  ;;  %v592_v27 = vld [vmem:[#allocation6 + $0x70] sm:$0xff]  ;;  %v593_v28 = vld [vmem:[#allocation6 + $0x78] sm:$0xff]  ;;  %v2184_v29 = vpack.c.bf16 %v641_v23, %v640_v22  ;;  %v544_v35 = vld [vmem:[%s2883_s16 + $0x10] sm:$0xff] }
  0xaf   : > { %2175 = vmatpush3.bf16.msra.mxu1 %v2174_v63  ;;  %v624_v30 = vld [vmem:[#allocation6 + $0x170] sm:$0xff]  ;;  %v625_v31 = vld [vmem:[#allocation6 + $0x178] sm:$0xff]  ;;  %v2154_v32 = vpack.c.bf16 %v593_v28, %v592_v27  ;;  %v549_v37 = vld [vmem:[%s2883_s16 + $0x38] sm:$0xff] }
  0xb0   : > { %2177 = vmatprep.subr.bf16.mxu1 %v2176_v4  ;;  %v2186_v33 = vpack.c.bf16 %v625_v31, %v624_v30  ;;  %v542_v34 = vld [vmem:[%s2883_s16] sm:$0xff]  ;;  %v547_v36 = vld [vmem:[%s2883_s16 + $0x28] sm:$0xff]  ;;  %v548_v39 = vld [vmem:[%s2883_s16 + $0x30] sm:$0xff] }
  0xb1   : > { %2147 = vmatpush3.bf16.msra.mxu0 %v2146_v10  ;;  %v546_v38 = vld [vmem:[%s2883_s16 + $0x20] sm:$0xff]  ;;  %v551_v40 = vld [vmem:[%s2883_s16 + $0x48] sm:$0xff]  ;;  %v553_v41 = vld [vmem:[%s2883_s16 + $0x58] sm:$0xff] }
  0xb2   : > { %2149 = vmatprep.subr.bf16.mxu0 %v2148_v14  ;;  %v550_v42 = vld [vmem:[%s2883_s16 + $0x40] sm:$0xff]  ;;  %v552_v43 = vld [vmem:[%s2883_s16 + $0x50] sm:$0xff]  ;;  %v555_v44 = vld [vmem:[%s2883_s16 + $0x68] sm:$0xff] }
  0xb3   : > { %2179 = vmatpush3.bf16.msra.mxu1 %v2178_v13  ;;  %v557_v45 = vld [vmem:[%s2883_s16 + $0x78] sm:$0xff]  ;;  %v554_v46 = vld [vmem:[%s2883_s16 + $0x60] sm:$0xff]  ;;  %v556_v47 = vld [vmem:[%s2883_s16 + $0x70] sm:$0xff] }
  0xb4   : > { %2181 = vmatprep.subr.bf16.mxu1 %v2180_v18  ;;  %v559_v48 = vld [vmem:[%s2883_s16 + $0x88] sm:$0xff]  ;;  %v561_v49 = vld [vmem:[%s2883_s16 + $0x98] sm:$0xff]  ;;  %v558_v50 = vld [vmem:[%s2883_s16 + $0x80] sm:$0xff] }
  0xb5   : > { %2151 = vmatpush3.bf16.msra.mxu0 %v2150_v24  ;;  %v560_v51 = vld [vmem:[%s2883_s16 + $0x90] sm:$0xff]  ;;  %v563_v52 = vld [vmem:[%s2883_s16 + $0xa8] sm:$0xff]  ;;  %v565_v53 = vld [vmem:[%s2883_s16 + $0xb8] sm:$0xff] }
  0xb6   : > { %2153 = vmatprep.subr.bf16.mxu0 %v2152_v26  ;;  %v562_v54 = vld [vmem:[%s2883_s16 + $0xa0] sm:$0xff]  ;;  %v564_v55 = vld [vmem:[%s2883_s16 + $0xb0] sm:$0xff]  ;;  %v567_v56 = vld [vmem:[%s2883_s16 + $0xc8] sm:$0xff] }
  0xb7   : > { %2183 = vmatpush3.bf16.msra.mxu1 %v2182_v25  ;;  %v569_v57 = vld [vmem:[%s2883_s16 + $0xd8] sm:$0xff]  ;;  %v566_v58 = vld [vmem:[%s2883_s16 + $0xc0] sm:$0xff]  ;;  %v568_v59 = vld [vmem:[%s2883_s16 + $0xd0] sm:$0xff] }
  0xb8   : > { %2185 = vmatprep.subr.bf16.mxu1 %v2184_v29  ;;  %v571_v60 = vld [vmem:[%s2883_s16 + $0xe8] sm:$0xff]  ;;  %v573_v61 = vld [vmem:[%s2883_s16 + $0xf8] sm:$0xff]  ;;  %v570_v62 = vld [vmem:[%s2883_s16 + $0xe0] sm:$0xff] }
  0xb9   : > { %2155 = vmatpush3.bf16.msra.mxu0 %v2154_v32  ;;  %v572_v63 = vld [vmem:[%s2883_s16 + $0xf0] sm:$0xff]  ;;  %v575_v0 = vld [vmem:[%s2883_s16 + $0x108] sm:$0xff]  ;;  %v577_v1 = vld [vmem:[%s2883_s16 + $0x118] sm:$0xff] }
  0xba   : > { %v574_v2 = vld [vmem:[%s2883_s16 + $0x100] sm:$0xff]  ;;  %v576_v3 = vld [vmem:[%s2883_s16 + $0x110] sm:$0xff]  ;;  %s1756_s16 = sshll.u32 %s510_s28, 3 }
  0xbb   : > { %2187 = vmatpush3.bf16.msra.mxu1 %v2186_v33  ;;  %v2942_v5 = vld [vmem:[%s3468_s5] ss:$0 sm:$0xff]  ;;  %s3286_s23 = scalar_lea.vmem %s3464_s1, %s1756_s16  ;;  %s3291_s29 = scalar_lea.vmem %s3465_s2, %s1756_s16 }
  0xbc   : > { %714 = vmatmul.mubr.f32.vlgmr.msra.gmra.mrb[0].mxu0 %v542_v34 }
  0xbd   : > { %718 = vmatprep.mubr.f32.mxu0 %v547_v36 }
  0xbe   : > { %824 = vmatmul.mubr.f32.vlgmr.msra.gmra.mrb[0].mxu1 %v544_v35 }
  0xbf   : > { %828 = vmatprep.mubr.f32.mxu1 %v549_v37 }
  0xc0   : > { %719 = vmatmul.mubr.f32.gmra.mrb[2].mxu0 %v546_v38 }
  0xc1   : > { %723 = vmatprep.mubr.f32.mxu0 %v551_v40 }
  0xc2   : > { %829 = vmatmul.mubr.f32.gmra.mrb[2].mxu1 %v548_v39 }
  0xc3   : > { %833 = vmatprep.mubr.f32.mxu1 %v553_v41 }
  0xc4   : > { %724 = vmatmul.mubr.f32.gmra.mrb[4].mxu0 %v550_v42 }
  0xc5   : > { %728 = vmatprep.mubr.f32.mxu0 %v555_v44 }
  0xc6   : > { %834 = vmatmul.mubr.f32.gmra.mrb[4].mxu1 %v552_v43 }
  0xc7   : > { %838 = vmatprep.mubr.f32.mxu1 %v557_v45 }
  0xc8   : > { %729 = vmatmul.mubr.f32.gmra.mrb[6].mxu0 %v554_v46 }
  0xc9   : > { %733 = vmatprep.mubr.f32.mxu0 %v559_v48 }
  0xca   : > { %839 = vmatmul.mubr.f32.gmra.mrb[6].mxu1 %v556_v47 }
  0xcb   : > { %843 = vmatprep.mubr.f32.mxu1 %v561_v49 }
  0xcc   : > { %734 = vmatmul.mubr.f32.gmra.mrb[8].mxu0 %v558_v50 }
  0xcd   : > { %738 = vmatprep.mubr.f32.mxu0 %v563_v52 }
  0xce   : > { %844 = vmatmul.mubr.f32.gmra.mrb[8].mxu1 %v560_v51 }
  0xcf   : > { %848 = vmatprep.mubr.f32.mxu1 %v565_v53 }
  0xd0   : > { %739 = vmatmul.mubr.f32.gmra.mrb[10].mxu0 %v562_v54 }
  0xd1   : > { %743 = vmatprep.mubr.f32.mxu0 %v567_v56 }
  0xd2   : > { %849 = vmatmul.mubr.f32.gmra.mrb[10].mxu1 %v564_v55 }
  0xd3   : > { %853 = vmatprep.mubr.f32.mxu1 %v569_v57 }
  0xd4   : > { %744 = vmatmul.mubr.f32.gmra.mrb[12].mxu0 %v566_v58 }
  0xd5   : > { %748 = vmatprep.mubr.f32.mxu0 %v571_v60 }
  0xd6   : > { %854 = vmatmul.mubr.f32.gmra.mrb[12].mxu1 %v568_v59 }
  0xd7   : > { %858 = vmatprep.mubr.f32.mxu1 %v573_v61 }
  0xd8   : > { %749 = vmatmul.mubr.f32.gmra.mrb[14].mxu0 %v570_v62 }
  0xd9   : > { %753 = vmatprep.mubr.f32.mxu0 %v575_v0 }
  0xda   : > { %859 = vmatmul.mubr.f32.gmra.mrb[14].mxu1 %v572_v63 }
  0xdb   : > { %863 = vmatprep.mubr.f32.mxu1 %v577_v1 }
  0xdc   : > { %754 = vmatmul.mubr.f32.gmra.mrb[16].mxu0 %v574_v2 }
  0xde   : > { %864 = vmatmul.mubr.f32.gmra.mrb[16].mxu1 %v576_v3 }
 0x18f   : > { %v1811_v4 = vpop.f32.mrb[0].mxu0 }
 0x190   : > { %v1812_v6 = vpop.f32.mrb[1].mxu0 }
 0x191   : > { %v1870_v7 = vpop.f32.mrb[0].mxu1  ;;  %v1813_v8 = vadd.f32 %v1812_v6, %v1811_v4 }
 0x192   : > { %v1871_v9 = vpop.f32.mrb[1].mxu1 }
 0x193   : > { %v1872_v10 = vadd.f32 %v1871_v9, %v1870_v7  ;;  %v716_v11 = vadd.f32 %v1813_v8, %v2942_v5  ;;  %v1814_v12 = vpop.f32.mrb[2].mxu0 }
 0x194   : > { %v1815_v13 = vpop.f32.mrb[3].mxu0 }
 0x195   : > { %v1873_v14 = vpop.f32.mrb[2].mxu1  ;;  %v1816_v15 = vadd.f32 %v1815_v13, %v1814_v12  ;;  %v2945_v17 = vadd.f32 %v1872_v10, %v716_v11 }
 0x196   : > { %v1874_v16 = vpop.f32.mrb[3].mxu1 }
 0x197   : > { %v1875_v18 = vadd.f32 %v1874_v16, %v1873_v14  ;;  %v721_v19 = vadd.f32 %v1816_v15, %v2942_v5  ;;  %v1817_v20 = vpop.f32.mrb[4].mxu0  ;;  %869 = vmax.xlane.f32.xlu0 %v2945_v17  ;;  %v950_v14 = vld [vmem:[%s3469_s6] sm:$0xff]  ;;  %v951_v15 = vld [vmem:[%s3469_s6 + $0x8] sm:$0xff]  ;;  %v952_v16 = vld [vmem:[%s3469_s6 + $0x10] sm:$0xff] }
 0x198   : > { %v1818_v21 = vpop.f32.mrb[5].mxu0 }
 0x199   : > { %v1876_v22 = vpop.f32.mrb[4].mxu1  ;;  %v1819_v23 = vadd.f32 %v1818_v21, %v1817_v20  ;;  %v2949_v25 = vadd.f32 %v1875_v18, %v721_v19  ;;  %v2648_v18 = vmov 0.0|0.0   ;;  %v953_v19 = vld [vmem:[%s3469_s6 + $0x18] sm:$0xff]  ;;  %v954_v21 = vld [vmem:[%s3469_s6 + $0x20] sm:$0xff] }
 0x19a   : > { %v1877_v24 = vpop.f32.mrb[5].mxu1  ;;  %2188 = vmatprep.subr.bf16.mxu0 %v2648_v18  ;;  %v2192_v20 = vpack.c.bf16 %v953_v19, %v952_v16  ;;  %v1138_v16 = vld [vmem:[%s3471_s8 + $0x8] sm:$0xff]  ;;  %v1156_v19 = vld [vmem:[%s3471_s8 + $0x98] sm:$0xff] }
 0x19b   : > { %v1878_v26 = vadd.f32 %v1877_v24, %v1876_v22  ;;  %v726_v27 = vadd.f32 %v1819_v23, %v2942_v5  ;;  %v1820_v28 = vpop.f32.mrb[6].mxu0  ;;  %871 = vmax.xlane.f32.xlu0 %v2949_v25  ;;  %v955_v22 = vld [vmem:[%s3469_s6 + $0x28] sm:$0xff]  ;;  %v956_v24 = vld [vmem:[%s3469_s6 + $0x30] sm:$0xff] }
 0x19c   : > { %v1821_v29 = vpop.f32.mrb[7].mxu0  ;;  %v2195_v23 = vpack.c.bf16 %v955_v22, %v954_v21  ;;  %v1139_v22 = vld [vmem:[%s3471_s8 + $0x10] sm:$0xff] }
 0x19d   : > { %v1879_v30 = vpop.f32.mrb[6].mxu1  ;;  %v1822_v31 = vadd.f32 %v1821_v29, %v1820_v28  ;;  %v2953_v33 = vadd.f32 %v1878_v26, %v726_v27  ;;  %v957_v26 = vld [vmem:[%s3469_s6 + $0x38] sm:$0xff]  ;;  %v958_v28 = vld [vmem:[%s3469_s6 + $0x40] sm:$0xff]  ;;  %v959_v29 = vld [vmem:[%s3469_s6 + $0x48] sm:$0xff] }
 0x19e   : > { %v1880_v32 = vpop.f32.mrb[7].mxu1  ;;  %v2198_v27 = vpack.c.bf16 %v957_v26, %v956_v24  ;;  %v1157_v24 = vld [vmem:[%s3471_s8 + $0xa0] sm:$0xff]  ;;  %v1158_v26 = vld [vmem:[%s3471_s8 + $0xa8] sm:$0xff] }
 0x19f   : > { %v1881_v34 = vadd.f32 %v1880_v32, %v1879_v30  ;;  %v731_v35 = vadd.f32 %v1822_v31, %v2942_v5  ;;  %v1823_v36 = vpop.f32.mrb[8].mxu0  ;;  %873 = vmax.xlane.f32.xlu1 %v2953_v33  ;;  %v2201_v30 = vpack.c.bf16 %v959_v29, %v958_v28  ;;  %v2220_v28 = vpack.c.bf16 %v1158_v26, %v1157_v24  ;;  %v1141_v29 = vld [vmem:[%s3471_s8 + $0x20] sm:$0xff] }
 0x1a0   : > { %v1824_v37 = vpop.f32.mrb[9].mxu0 }
 0x1a1   : > { %v1882_v38 = vpop.f32.mrb[8].mxu1  ;;  %v1825_v39 = vadd.f32 %v1824_v37, %v1823_v36  ;;  %v2957_v41 = vadd.f32 %v1881_v34, %v731_v35 }
 0x1a2   : > { %v1883_v40 = vpop.f32.mrb[9].mxu1 }
 0x1a3   : > { %v1884_v42 = vadd.f32 %v1883_v40, %v1882_v38  ;;  %v736_v43 = vadd.f32 %v1825_v39, %v2942_v5  ;;  %v1826_v44 = vpop.f32.mrb[10].mxu0  ;;  %875 = vmax.xlane.f32.xlu1 %v2957_v41 }
 0x1a4   : > { %v1827_v45 = vpop.f32.mrb[11].mxu0 }
 0x1a5   : > { %v1885_v46 = vpop.f32.mrb[10].mxu1  ;;  %v1828_v47 = vadd.f32 %v1827_v45, %v1826_v44  ;;  %v2961_v49 = vadd.f32 %v1884_v42, %v736_v43 }
 0x1a6   : > { %v1886_v48 = vpop.f32.mrb[11].mxu1 }
 0x1a7   : > { %v1887_v50 = vadd.f32 %v1886_v48, %v1885_v46  ;;  %v741_v51 = vadd.f32 %v1828_v47, %v2942_v5  ;;  %v1829_v52 = vpop.f32.mrb[12].mxu0  ;;  %877 = vmax.xlane.f32.xlu0 %v2961_v49 }
 0x1a8   : > { %v1830_v53 = vpop.f32.mrb[13].mxu0 }
 0x1a9   : > { %v1888_v54 = vpop.f32.mrb[12].mxu1  ;;  %v1831_v55 = vadd.f32 %v1830_v53, %v1829_v52  ;;  %v2965_v57 = vadd.f32 %v1887_v50, %v741_v51 }
 0x1aa   : > { %v1889_v56 = vpop.f32.mrb[13].mxu1 }
 0x1ab   : > { %v1890_v58 = vadd.f32 %v1889_v56, %v1888_v54  ;;  %v746_v59 = vadd.f32 %v1831_v55, %v2942_v5  ;;  %v1832_v60 = vpop.f32.mrb[14].mxu0  ;;  %879 = vmax.xlane.f32.xlu1 %v2965_v57  ;;  %v960_v56 = vld [vmem:[%s3469_s6 + $0x50] sm:$0xff] }
 0x1ac   : > { %v1833_v61 = vpop.f32.mrb[15].mxu0 }
 0x1ad   : > { %v1891_v62 = vpop.f32.mrb[14].mxu1  ;;  %v1834_v63 = vadd.f32 %v1833_v61, %v1832_v60  ;;  %v2969_v1 = vadd.f32 %v1890_v58, %v746_v59 }
 0x1ae   : > { %v1892_v0 = vpop.f32.mrb[15].mxu1 }
 0x1af   : > { %v1893_v2 = vadd.f32 %v1892_v0, %v1891_v62  ;;  %v751_v3 = vadd.f32 %v1834_v63, %v2942_v5  ;;  %v1835_v4 = vpop.f32.mrb[16].mxu0  ;;  %881 = vmax.xlane.f32.xlu0 %v2969_v1  ;;  %v962_v63 = vld [vmem:[%s3469_s6 + $0x60] sm:$0xff]  ;;  %v963_v0 = vld [vmem:[%s3469_s6 + $0x68] sm:$0xff] }
 0x1b0   : > { %v1836_v6 = vpop.f32.mrb[17].mxu0 }
 0x1b1   : > { %v1894_v7 = vpop.f32.mrb[16].mxu1  ;;  %v1837_v8 = vadd.f32 %v1836_v6, %v1835_v4  ;;  %v2973_v10 = vadd.f32 %v1893_v2, %v751_v3  ;;  %v964_v4 = vld [vmem:[%s3469_s6 + $0x70] sm:$0xff]  ;;  %v965_v6 = vld [vmem:[%s3469_s6 + $0x78] sm:$0xff] }
 0x1b2   : > { %v1895_v9 = vpop.f32.mrb[17].mxu1 }
 0x1b3   : > { %v1896_v11 = vadd.f32 %v1895_v9, %v1894_v7  ;;  %v756_v12 = vadd.f32 %v1837_v8, %v2942_v5  ;;  %883 = vmax.xlane.f32.xlu1 %v2973_v10  ;;  %v2189_v5 = vpack.c.bf16 %v951_v15, %v950_v14  ;;  %v2210_v7 = vpack.c.bf16 %v965_v6, %v964_v4  ;;  %v1137_v14 = vld [vmem:[%s3471_s8] sm:$0xff]  ;;  %v1171_v6 = vld [vmem:[%s3471_s8 + $0x110] sm:$0xff] }
 0x1b4   : > { %v2650_v9 = vmov 0.0  }
 0x1b5   : > { %v2977_v13 = vadd.f32 %v1896_v11, %v756_v12  ;;  %2190 = vmatpush3.bf16.msra.mxu0 %v2189_v5  ;;  %2038 = vmatprep.mubr.msk.f32.mxu0 %vm2649_vm0, %v2650_v9  ;;  %v1153_v12 = vld [vmem:[%s3471_s8 + $0x80] sm:$0xff]  ;;  %v1155_v5 = vld [vmem:[%s3471_s8 + $0x90] sm:$0xff] }
 0x1b6   : > { %2191 = vmatprep.subr.bf16.mxu0 %v2648_v18  ;;  %v2216_v21 = vpack.c.bf16 %v1156_v19, %v1155_v5 }
 0x1b7   : > { %885 = vmax.xlane.f32.xlu0 %v2977_v13 }
 0x1b9   : > { %2193 = vmatpush3.bf16.msra.mxu0 %v2192_v20  ;;  %v2214_v20 = vpack.c.bf16 %v1138_v16, %v1137_v14  ;;  %v1174_v16 = vld [vmem:[%s3471_s8 + $0x128] sm:$0xff] }
 0x1ba   : > { %2194 = vmatprep.subr.bf16.mxu0 %v2648_v18 }
 0x1bd   : > { %2196 = vmatpush3.bf16.msra.mxu0 %v2195_v23  ;;  %v1140_v23 = vld [vmem:[%s3471_s8 + $0x18] sm:$0xff] }
 0x1be   : > { %2197 = vmatprep.subr.bf16.mxu0 %v2648_v18 }
 0x1c1   : > { %2199 = vmatpush3.bf16.msra.mxu0 %v2198_v27  ;;  %v2218_v27 = vpack.c.bf16 %v1140_v23, %v1139_v22  ;;  %v1176_v22 = vld [vmem:[%s3471_s8 + $0x138] sm:$0xff] }
 0x1c2   : > { %2200 = vmatprep.subr.bf16.mxu0 %v2648_v18 }
 0x1c5   : > { %2202 = vmatpush3.bf16.msra.mxu0 %v2201_v30  ;;  %v1142_v30 = vld [vmem:[%s3471_s8 + $0x28] sm:$0xff] }
 0x1c6   : > { %2203 = vmatprep.subr.bf16.mxu0 %v2648_v18 }
 0x224   : > { %v870_v31 = vpop.xlane.xlu0 %869 }
 0x225   : > { %v887_v32 = vsub.f32 %v2945_v17, %v870_v31  ;;  %v1159_v31 = vld [vmem:[%s3471_s8 + $0xb0] sm:$0xff] }
 0x227   : > { %v896_v34 = vmul.f32 1.442695, %v887_v32  ;;  %v1160_v32 = vld [vmem:[%s3471_s8 + $0xb8] sm:$0xff] }
 0x228   : > { %v872_v35 = vpop.xlane.xlu0 %871 }
 0x229   : > { %2407 = vpow2.f32 %v896_v34  ;;  %v888_v36 = vsub.f32 %v2949_v25, %v872_v35  ;;  %v2222_v34 = vpack.c.bf16 %v1142_v30, %v1141_v29  ;;  %v2224_v35 = vpack.c.bf16 %v1160_v32, %v1159_v31  ;;  %v1179_v32 = vld [vmem:[%s3471_s8 + $0x150] sm:$0xff] }
 0x22b   : > { %v898_v37 = vmul.f32 1.442695, %v888_v36  ;;  %v1143_v36 = vld [vmem:[%s3471_s8 + $0x30] sm:$0xff] }
 0x22c   : > { %v874_v38 = vpop.xlane.xlu1 %873 }
 0x22d   : > { %2409 = vpow2.f32 %v898_v37  ;;  %v889_v39 = vsub.f32 %v2953_v33, %v874_v38  ;;  %v1144_v37 = vld [vmem:[%s3471_s8 + $0x38] sm:$0xff]  ;;  %v1161_v38 = vld [vmem:[%s3471_s8 + $0xc0] sm:$0xff] }
 0x22f   : > { %v900_v40 = vmul.f32 1.442695, %v889_v39  ;;  %v1162_v39 = vld [vmem:[%s3471_s8 + $0xc8] sm:$0xff] }
 0x230   : > { %v876_v42 = vpop.xlane.xlu1 %875 }
 0x231   : > { %2411 = vpow2.f32 %v900_v40  ;;  %v890_v43 = vsub.f32 %v2957_v41, %v876_v42  ;;  %v2226_v40 = vpack.c.bf16 %v1144_v37, %v1143_v36  ;;  %v2228_v42 = vpack.c.bf16 %v1162_v39, %v1161_v38  ;;  %v1181_v38 = vld [vmem:[%s3471_s8 + $0x160] sm:$0xff]  ;;  %v1182_v39 = vld [vmem:[%s3471_s8 + $0x168] sm:$0xff] }
 0x233   : > { %v3020_v44 = vpop.eup %2407  ;;  %v902_v45 = vmul.f32 1.442695, %v890_v43  ;;  %v1145_v43 = vld [vmem:[%s3471_s8 + $0x40] sm:$0xff] }
 0x234   : > { %914 = vadd.xlane.f32.xlu1 %v3020_v44  ;;  %v878_v17 = vpop.xlane.xlu0 %877 }
 0x235   : > { %2413 = vpow2.f32 %v902_v45  ;;  %v891_v46 = vsub.f32 %v2961_v49, %v878_v17  ;;  %v1146_v45 = vld [vmem:[%s3471_s8 + $0x48] sm:$0xff]  ;;  %v1163_v17 = vld [vmem:[%s3471_s8 + $0xd0] sm:$0xff] }
 0x237   : > { %v3024_v25 = vpop.eup %2409  ;;  %v904_v47 = vmul.f32 1.442695, %v891_v46  ;;  %v1164_v46 = vld [vmem:[%s3471_s8 + $0xd8] sm:$0xff] }
 0x238   : > { %v880_v48 = vpop.xlane.xlu1 %879  ;;  %916 = vadd.xlane.f32.xlu0 %v3024_v25 }
 0x239   : > { %2415 = vpow2.f32 %v904_v47  ;;  %v892_v33 = vsub.f32 %v2965_v57, %v880_v48  ;;  %v961_v57 = vld [vmem:[%s3469_s6 + $0x58] sm:$0xff]  ;;  %v2230_v47 = vpack.c.bf16 %v1146_v45, %v1145_v43  ;;  %v2232_v48 = vpack.c.bf16 %v1164_v46, %v1163_v17  ;;  %v1167_v46 = vld [vmem:[%s3471_s8 + $0xf0] sm:$0xff] }
 0x23a   : > { %v2204_v58 = vpack.c.bf16 %v961_v57, %v960_v56  ;;  %v1150_v56 = vld [vmem:[%s3471_s8 + $0x68] sm:$0xff] }
 0x23b   : > { %v3028_v50 = vpop.eup %2411  ;;  %v906_v41 = vmul.f32 1.442695, %v892_v33  ;;  %v1147_v33 = vld [vmem:[%s3471_s8 + $0x50] sm:$0xff] }
 0x23c   : > { %918 = vadd.xlane.f32.xlu1 %v3028_v50  ;;  %v882_v51 = vpop.xlane.xlu0 %881  ;;  %2205 = vmatpush3.bf16.msra.mxu0 %v2204_v58 }
 0x23d   : > { %2417 = vpow2.f32 %v906_v41  ;;  %v893_v52 = vsub.f32 %v2969_v1, %v882_v51  ;;  %2206 = vmatprep.subr.bf16.mxu0 %v2648_v18  ;;  %v2207_v1 = vpack.c.bf16 %v963_v0, %v962_v63  ;;  %v1148_v41 = vld [vmem:[%s3471_s8 + $0x58] sm:$0xff]  ;;  %v1165_v51 = vld [vmem:[%s3471_s8 + $0xe0] sm:$0xff]  ;;  %v1170_v63 = vld [vmem:[%s3471_s8 + $0x108] sm:$0xff] }
 0x23f   : > { %v3032_v53 = vpop.eup %2413  ;;  %v908_v49 = vmul.f32 1.442695, %v893_v52  ;;  %v1166_v52 = vld [vmem:[%s3471_s8 + $0xe8] sm:$0xff] }
 0x240   : > { %v884_v54 = vpop.xlane.xlu1 %883  ;;  %920 = vadd.xlane.f32.xlu0 %v3032_v53  ;;  %2208 = vmatpush3.bf16.msra.mxu0 %v2207_v1 }
 0x241   : > { %2419 = vpow2.f32 %v908_v49  ;;  %v894_v55 = vsub.f32 %v2973_v10, %v884_v54  ;;  %2209 = vmatprep.subr.bf16.mxu0 %v2648_v18  ;;  %v2234_v49 = vpack.c.bf16 %v1148_v41, %v1147_v33  ;;  %v2236_v54 = vpack.c.bf16 %v1166_v52, %v1165_v51  ;;  %v1152_v33 = vld [vmem:[%s3471_s8 + $0x78] sm:$0xff] }
 0x242   : > { %v1184_v41 = vld [vmem:[%s3471_s8 + $0x178] sm:$0xff] }
 0x243   : > { %v3042_v59 = vpop.eup %2415  ;;  %v910_v60 = vmul.f32 1.442695, %v894_v55  ;;  %v1149_v55 = vld [vmem:[%s3471_s8 + $0x60] sm:$0xff] }
 0x244   : > { %922 = vadd.xlane.f32.xlu1 %v3042_v59  ;;  %v886_v61 = vpop.xlane.xlu0 %885  ;;  %2211 = vmatpush3.bf16.msra.mxu0 %v2210_v7  ;;  %v2238_v57 = vpack.c.bf16 %v1150_v56, %v1149_v55  ;;  %v1172_v7 = vld [vmem:[%s3471_s8 + $0x118] sm:$0xff]  ;;  %v1083_v55 = vld [vmem:[%s3286_s23] sm:$0xff] }
 0x245   : > { %2421 = vpow2.f32 %v910_v60  ;;  %v895_v62 = vsub.f32 %v2977_v13, %v886_v61  ;;  %2244 = vmatprep.subr.bf16.mxu0 %v2648_v18  ;;  %v1154_v13 = vld [vmem:[%s3471_s8 + $0x88] sm:$0xff] }
 0x246   : > { %v2212_v15 = vpack.c.bf16 %v1154_v13, %v1153_v12  ;;  %v3177_v13 = vpack.c.bf16 %v1172_v7, %v1171_v6  ;;  %v1119_v56 = vld [vmem:[%s2893_s22] sm:$0xff] }
 0x247   : > { %v3053_v2 = vpop.eup %2417  ;;  %v912_v3 = vmul.f32 1.442695, %v895_v62  ;;  %v1169_v62 = vld [vmem:[%s3471_s8 + $0x100] sm:$0xff]  ;;  %v1084_v6 = vld [vmem:[%s3286_s23 + $0x8] sm:$0xff] }
 0x248   : > { %924 = vadd.xlane.f32.xlu0 %v3053_v2  ;;  %2213 = vmatprep.subr.bf16.mxu1 %v2212_v15  ;;  %v3165_v1 = vpack.c.bf16 %v1170_v63, %v1169_v62  ;;  %v1173_v15 = vld [vmem:[%s3471_s8 + $0x120] sm:$0xff] }
 0x249   : > { %2423 = vpow2.f32 %v912_v3  ;;  %2215 = vmatpush3.bf16.msra.mxu1 %v2214_v20  ;;  %v3190_v19 = vpack.c.bf16 %v1174_v16, %v1173_v15 }
 0x24a   : > { %2217 = vmatprep.subr.bf16.mxu1 %v2216_v21  ;;  %v1175_v21 = vld [vmem:[%s3471_s8 + $0x130] sm:$0xff] }
 0x24b   : > { %v3063_v8 = vpop.eup %2419  ;;  %v3203_v24 = vpack.c.bf16 %v1176_v22, %v1175_v21 }
 0x24c   : > { %926 = vadd.xlane.f32.xlu1 %v3063_v8 }
 0x24d   : > { %2219 = vmatpush3.bf16.msra.mxu1 %v2218_v27  ;;  %v1177_v27 = vld [vmem:[%s3471_s8 + $0x140] sm:$0xff] }
 0x24e   : > { %2221 = vmatprep.subr.bf16.mxu1 %v2220_v28  ;;  %v1178_v28 = vld [vmem:[%s3471_s8 + $0x148] sm:$0xff] }
 0x24f   : > { %v3069_v10 = vpop.eup %2421  ;;  %v3216_v30 = vpack.c.bf16 %v1178_v28, %v1177_v27  ;;  %v1104_v27 = vld [vmem:[%s3291_s29 + $0x18] sm:$0xff] }
 0x250   : > { %928 = vadd.xlane.f32.xlu0 %v3069_v10  ;;  %v1122_v28 = vld [vmem:[%s2893_s22 + $0x18] sm:$0xff] }
 0x251   : > { %2223 = vmatpush3.bf16.msra.mxu1 %v2222_v34  ;;  %v1180_v34 = vld [vmem:[%s3471_s8 + $0x158] sm:$0xff] }
 0x252   : > { %2225 = vmatprep.subr.bf16.mxu1 %v2224_v35  ;;  %v3229_v36 = vpack.c.bf16 %v1180_v34, %v1179_v32 }
 0x253   : > { %v3072_v11 = vpop.eup %2423 }
 0x254   : > { %930 = vadd.xlane.f32.xlu1 %v3072_v11 }
 0x255   : > { %2227 = vmatpush3.bf16.msra.mxu1 %v2226_v40 }
 0x256   : > { %2229 = vmatprep.subr.bf16.mxu1 %v2228_v42  ;;  %v3242_v42 = vpack.c.bf16 %v1182_v39, %v1181_v38  ;;  %v1087_v38 = vld [vmem:[%s3286_s23 + $0x20] sm:$0xff] }
 0x259   : > { %2231 = vmatpush3.bf16.msra.mxu1 %v2230_v47  ;;  %v1183_v47 = vld [vmem:[%s3471_s8 + $0x170] sm:$0xff] }
 0x25a   : > { %2233 = vmatprep.subr.bf16.mxu1 %v2232_v48  ;;  %v3274_v52 = vpack.c.bf16 %v1184_v41, %v1183_v47 }
 0x25d   : > { %2235 = vmatpush3.bf16.msra.mxu1 %v2234_v49  ;;  %v3296_v49 = vld [vmem:[%s3470_s7] ss:$0 sm:$0xff] }
 0x25e   : > { %2237 = vmatprep.subr.bf16.mxu1 %v2236_v54 }
 0x261   : > { %2239 = vmatpush3.bf16.msra.mxu1 %v2238_v57  ;;  %v1101_v57 = vld [vmem:[%s3291_s29] sm:$0xff] }
 0x2c1   : > { %v915_v58 = vpop.xlane.xlu1 %914 }
 0x2c2   : > { %2425 = vrcp.f32 %v915_v58 }
 0x2c5   : > { %v917_v60 = vpop.xlane.xlu0 %916 }
 0x2c6   : > { %2427 = vrcp.f32 %v917_v60 }
 0x2c9   : > { %v919_v61 = vpop.xlane.xlu1 %918 }
 0x2ca   : > { %2429 = vrcp.f32 %v919_v61 }
 0x2cc   : > { %v2426_v0 = vpop.eup %2425 }
 0x2cd   : > { %v941_v3 = vmul.f32 %v2426_v0, %v3020_v44  ;;  %v921_v4 = vpop.xlane.xlu0 %920 }
 0x2ce   : > { %2431 = vrcp.f32 %v921_v4  ;;  %v1120_v4 = vld [vmem:[%s2893_s22 + $0x8] sm:$0xff] }
 0x2cf   : > { %2039 = vmatmul.mubr.f32.vlgmr.msra.gmra.mrb[18].mxu0 %v941_v3  ;;  %v1102_v3 = vld [vmem:[%s3291_s29 + $0x8] sm:$0xff] }
 0x2d0   : > { %v2428_v12 = vpop.eup %2427  ;;  %2041 = vmatprep.mubr.msk.f32.mxu0 %vm2649_vm0, %v2650_v9  ;;  %2246 = vmatpush3.bf16.msra.mxu0 %v3165_v1 }
 0x2d1   : > { %v923_v44 = vpop.xlane.xlu1 %922  ;;  %v942_v14 = vmul.f32 %v2428_v12, %v3024_v25  ;;  %2247 = vmatprep.subr.bf16.mxu0 %v2648_v18 }
 0x2d2   : > { %2433 = vrcp.f32 %v923_v44 }
 0x2d3   : > { %2042 = vmatmul.mubr.f32.gmra.mrb[20].mxu0 %v942_v14 }
 0x2d4   : > { %v2430_v5 = vpop.eup %2429  ;;  %2044 = vmatprep.mubr.msk.f32.mxu0 %vm2649_vm0, %v2650_v9  ;;  %2249 = vmatpush3.bf16.msra.mxu0 %v3177_v13 }
 0x2d5   : > { %v925_v25 = vpop.xlane.xlu0 %924  ;;  %v943_v20 = vmul.f32 %v2430_v5, %v3028_v50  ;;  %2250 = vmatprep.subr.bf16.mxu0 %v2648_v18  ;;  %v1103_v5 = vld [vmem:[%s3291_s29 + $0x10] sm:$0xff] }
 0x2d6   : > { %2435 = vrcp.f32 %v925_v25  ;;  %v1121_v25 = vld [vmem:[%s2893_s22 + $0x10] sm:$0xff] }
 0x2d7   : > { %2045 = vmatmul.mubr.f32.gmra.mrb[22].mxu0 %v943_v20  ;;  %v1085_v20 = vld [vmem:[%s3286_s23 + $0x10] sm:$0xff] }
 0x2d8   : > { %v2432_v23 = vpop.eup %2431  ;;  %2047 = vmatprep.mubr.msk.f32.mxu0 %vm2649_vm0, %v2650_v9  ;;  %2252 = vmatpush3.bf16.msra.mxu0 %v3190_v19 }
 0x2d9   : > { %v927_v50 = vpop.xlane.xlu1 %926  ;;  %v944_v26 = vmul.f32 %v2432_v23, %v3032_v53  ;;  %2253 = vmatprep.subr.bf16.mxu0 %v2648_v18 }
 0x2da   : > { %2437 = vrcp.f32 %v927_v50 }
 0x2db   : > { %2048 = vmatmul.mubr.f32.gmra.mrb[24].mxu0 %v944_v26 }
 0x2dc   : > { %v2434_v29 = vpop.eup %2433  ;;  %2050 = vmatprep.mubr.msk.f32.mxu0 %vm2649_vm0, %v2650_v9  ;;  %2255 = vmatpush3.bf16.msra.mxu0 %v3203_v24 }
 0x2dd   : > { %v929_v53 = vpop.xlane.xlu0 %928  ;;  %v945_v31 = vmul.f32 %v2434_v29, %v3042_v59  ;;  %2256 = vmatprep.subr.bf16.mxu0 %v2648_v18  ;;  %v1086_v29 = vld [vmem:[%s3286_s23 + $0x18] sm:$0xff] }
 0x2de   : > { %2439 = vrcp.f32 %v929_v53 }
 0x2df   : > { %2051 = vmatmul.mubr.f32.gmra.mrb[26].mxu0 %v945_v31 }
 0x2e0   : > { %v2436_v35 = vpop.eup %2435  ;;  %2053 = vmatprep.mubr.msk.f32.mxu0 %vm2649_vm0, %v2650_v9  ;;  %2258 = vmatpush3.bf16.msra.mxu0 %v3216_v30 }
 0x2e1   : > { %v931_v59 = vpop.xlane.xlu1 %930  ;;  %v946_v37 = vmul.f32 %v2436_v35, %v3053_v2  ;;  %2259 = vmatprep.subr.bf16.mxu0 %v2648_v18 }
 0x2e2   : > { %2441 = vrcp.f32 %v931_v59  ;;  %v1105_v59 = vld [vmem:[%s3291_s29 + $0x20] sm:$0xff] }
 0x2e3   : > { %2054 = vmatmul.mubr.f32.gmra.mrb[28].mxu0 %v946_v37  ;;  %v1123_v37 = vld [vmem:[%s2893_s22 + $0x20] sm:$0xff] }
 0x2e4   : > { %v2438_v40 = vpop.eup %2437  ;;  %2056 = vmatprep.mubr.msk.f32.mxu0 %vm2649_vm0, %v2650_v9  ;;  %2261 = vmatpush3.bf16.msra.mxu0 %v3229_v36 }
 0x2e5   : > { %v947_v2 = vmul.f32 %v2438_v40, %v3063_v8  ;;  %2262 = vmatprep.subr.bf16.mxu0 %v2648_v18 }
 0x2e7   : > { %2057 = vmatmul.mubr.f32.gmra.mrb[30].mxu0 %v947_v2 }
 0x2e8   : > { %v2440_v43 = vpop.eup %2439  ;;  %2059 = vmatprep.mubr.msk.f32.mxu0 %vm2649_vm0, %v2650_v9  ;;  %2264 = vmatpush3.bf16.msra.mxu0 %v3242_v42 }
 0x2e9   : > { %v948_v45 = vmul.f32 %v2440_v43, %v3069_v10  ;;  %2265 = vmatprep.subr.bf16.mxu0 %v2648_v18  ;;  %v1168_v10 = vld [vmem:[%s3471_s8 + $0xf8] sm:$0xff] }
 0x2ea   : > { %v2240_v48 = vpack.c.bf16 %v1168_v10, %v1167_v46 }
 0x2eb   : > { %2060 = vmatmul.mubr.f32.gmra.mrb[32].mxu0 %v948_v45 }
 0x2ec   : > { %v2442_v17 = vpop.eup %2441  ;;  %2062 = vmatprep.mubr.msk.f32.mxu0 %vm2649_vm0, %v2650_v9  ;;  %2241 = vmatprep.subr.bf16.mxu1 %v2240_v48 }
 0x2ed   : > { %v949_v8 = vmul.f32 %v2442_v17, %v3072_v11  ;;  %v1151_v11 = vld [vmem:[%s3471_s8 + $0x70] sm:$0xff]  ;;  %2267 = vmatpush3.bf16.msra.mxu0 %v3274_v52  ;;  %v1106_v17 = vld [vmem:[%s3291_s29 + $0x28] sm:$0xff] }
 0x2ee   : > { %v2242_v51 = vpack.c.bf16 %v1152_v33, %v1151_v11  ;;  %v1107_v11 = vld [vmem:[%s3291_s29 + $0x30] sm:$0xff] }
 0x2ef   : > { %2063 = vmatmul.mubr.f32.gmra.mrb[34].mxu0 %v949_v8  ;;  %v1088_v8 = vld [vmem:[%s3286_s23 + $0x28] sm:$0xff]  ;;  %v1089_v33 = vld [vmem:[%s3286_s23 + $0x30] sm:$0xff] }
 0x2f0   : > { %2097 = vmatprep.mubr.msk.f32.mxu0 %vm2649_vm0, %v2650_v9  ;;  %2243 = vmatpush3.bf16.msra.mxu1 %v2242_v51 }
 0x2f1   : > { %2268 = vmatprep.subr.bf16.mxu1 %v2648_v18 }
 0x3a2   : > { %v1039_v54 = vpop.f32.mrb[18].mxu0 }
 0x3a3   : > { %v1040_v58 = vadd.f32 %v3296_v49, %v1039_v54  ;;  %v2040_v60 = vpop.f32.mrb[19].mxu0 }
 0x3a5   : > { %v1092_v61 = vmul.f32 %v1083_v55, %v1040_v58  ;;  %v1128_v62 = vmul.f32 %v1119_v56, %v1040_v58  ;;  %v1110_v63 = vmul.f32 %v1101_v57, %v1040_v58  ;;  %v1108_v56 = vld [vmem:[%s3291_s29 + $0x38] sm:$0xff] }
 0x3a6   : > { %v1044_v0 = vpop.f32.mrb[20].mxu0  ;;  %v1090_v57 = vld [vmem:[%s3286_s23 + $0x38] sm:$0xff] }
 0x3a7   : > { %v1045_v7 = vadd.f32 %v3296_v49, %v1044_v0  ;;  %v2043_v12 = vpop.f32.mrb[21].mxu0  ;;  %1256 = vmatprep.mubr.f32.mxu1 %v1110_v63  ;;  %2098 = vmatmul.mubr.f32.vlgmr.msra.gmra.mrb[36].mxu0 %v1128_v62  ;;  %v1091_v0 = vld [vmem:[%s3286_s23 + $0x40] sm:$0xff] }
 0x3a8   : > { %1257 = vmatmul.mubr.f32.vlgmr.msra.gmra.mrb[18].mxu1 %v1092_v61  ;;  %2100 = vmatprep.mubr.msk.f32.mxu0 %vm2649_vm0, %v2650_v9  ;;  %v1124_v12 = vld [vmem:[%s2893_s22 + $0x28] sm:$0xff] }
 0x3a9   : > { %2276 = vmatpush3.bf16.msra.mxu1 %v3165_v1  ;;  %v1111_v44 = vmul.f32 %v1102_v3, %v1045_v7  ;;  %v1129_v14 = vmul.f32 %v1120_v4, %v1045_v7  ;;  %v1093_v15 = vmul.f32 %v1084_v6, %v1045_v7 }
 0x3aa   : > { %v1049_v16 = vpop.f32.mrb[22].mxu0  ;;  %2269 = vmatprep.subr.bf16.mxu1 %v2648_v18 }
 0x3ab   : > { %v1050_v21 = vadd.f32 %v3296_v49, %v1049_v16  ;;  %v2046_v22 = vpop.f32.mrb[23].mxu0  ;;  %1261 = vmatprep.mubr.f32.mxu1 %v1111_v44  ;;  %2101 = vmatmul.mubr.f32.gmra.mrb[38].mxu0 %v1129_v14  ;;  %v1126_v44 = vld [vmem:[%s2893_s22 + $0x38] sm:$0xff] }
 0x3ac   : > { %1262 = vmatmul.mubr.f32.gmra.mrb[20].mxu1 %v1093_v15  ;;  %2103 = vmatprep.mubr.msk.f32.mxu0 %vm2649_vm0, %v2650_v9 }
 0x3ad   : > { %2277 = vmatpush3.bf16.msra.mxu1 %v3177_v13  ;;  %v1112_v1 = vmul.f32 %v1103_v5, %v1050_v21  ;;  %v1130_v23 = vmul.f32 %v1121_v25, %v1050_v21  ;;  %v1094_v50 = vmul.f32 %v1085_v20, %v1050_v21  ;;  %v3368_v20 = vld [vmem:[%s3472_s9] ss:$0 sm:$0xff] }
 0x3ae   : > { %v1054_v26 = vpop.f32.mrb[24].mxu0  ;;  %2270 = vmatprep.subr.bf16.mxu1 %v2648_v18 }
 0x3af   : > { %v1055_v53 = vadd.f32 %v3296_v49, %v1054_v26  ;;  %v2049_v31 = vpop.f32.mrb[25].mxu0  ;;  %1266 = vmatprep.mubr.f32.mxu1 %v1112_v1  ;;  %2104 = vmatmul.mubr.f32.gmra.mrb[40].mxu0 %v1130_v23 }
 0x3b0   : > { %1267 = vmatmul.mubr.f32.gmra.mrb[22].mxu1 %v1094_v50  ;;  %2106 = vmatprep.mubr.msk.f32.mxu0 %vm2649_vm0, %v2650_v9 }
 0x3b1   : > { %2278 = vmatpush3.bf16.msra.mxu1 %v3190_v19  ;;  %v1113_v13 = vmul.f32 %v1104_v27, %v1055_v53  ;;  %v1131_v32 = vmul.f32 %v1122_v28, %v1055_v53  ;;  %v1095_v34 = vmul.f32 %v1086_v29, %v1055_v53 }
 0x3b2   : > { %v1059_v35 = vpop.f32.mrb[26].mxu0  ;;  %2271 = vmatprep.subr.bf16.mxu1 %v2648_v18 }
 0x3b3   : > { %v1060_v39 = vadd.f32 %v3296_v49, %v1059_v35  ;;  %v2052_v40 = vpop.f32.mrb[27].mxu0  ;;  %1271 = vmatprep.mubr.f32.mxu1 %v1113_v13  ;;  %2107 = vmatmul.mubr.f32.gmra.mrb[42].mxu0 %v1131_v32 }
 0x3b4   : > { %1272 = vmatmul.mubr.f32.gmra.mrb[24].mxu1 %v1095_v34  ;;  %2109 = vmatprep.mubr.msk.f32.mxu0 %vm2649_vm0, %v2650_v9 }
 0x3b5   : > { %2279 = vmatpush3.bf16.msra.mxu1 %v3203_v24  ;;  %v1114_v19 = vmul.f32 %v1105_v59, %v1060_v39  ;;  %v1132_v2 = vmul.f32 %v1123_v37, %v1060_v39  ;;  %v1096_v43 = vmul.f32 %v1087_v38, %v1060_v39 }
 0x3b6   : > { %v1064_v45 = vpop.f32.mrb[28].mxu0  ;;  %2272 = vmatprep.subr.bf16.mxu1 %v2648_v18 }
 0x3b7   : > { %v1065_v46 = vadd.f32 %v3296_v49, %v1064_v45  ;;  %v2055_v10 = vpop.f32.mrb[29].mxu0  ;;  %1276 = vmatprep.mubr.f32.mxu1 %v1114_v19  ;;  %2110 = vmatmul.mubr.f32.gmra.mrb[44].mxu0 %v1132_v2 }
 0x3b8   : > { %1277 = vmatmul.mubr.f32.gmra.mrb[26].mxu1 %v1096_v43 }
 0x3b9   : > { %2280 = vmatpush3.bf16.msra.mxu1 %v3216_v30  ;;  %v1115_v24 = vmul.f32 %v1106_v17, %v1065_v46  ;;  %v1097_v47 = vmul.f32 %v1088_v8, %v1065_v46 }
 0x3ba   : > { %v1069_v48 = vpop.f32.mrb[30].mxu0  ;;  %2273 = vmatprep.subr.bf16.mxu1 %v2648_v18 }
 0x3bb   : > { %v1070_v41 = vadd.f32 %v3296_v49, %v1069_v48  ;;  %v2058_v51 = vpop.f32.mrb[31].mxu0  ;;  %1281 = vmatprep.mubr.f32.mxu1 %v1115_v24 }
 0x3bc   : > { %1282 = vmatmul.mubr.f32.gmra.mrb[28].mxu1 %v1097_v47 }
 0x3bd   : > { %v1116_v54 = vmul.f32 %v1107_v11, %v1070_v41  ;;  %2281 = vmatpush3.bf16.msra.mxu1 %v3229_v36  ;;  %v1098_v30 = vmul.f32 %v1089_v33, %v1070_v41  ;;  %v1109_v36 = vld [vmem:[%s3291_s29 + $0x40] sm:$0xff] }
 0x3be   : > { %v1074_v55 = vpop.f32.mrb[32].mxu0  ;;  %2274 = vmatprep.subr.bf16.mxu1 %v2648_v18 }
 0x3bf   : > { %v1075_v58 = vadd.f32 %v3296_v49, %v1074_v55  ;;  %v2061_v60 = vpop.f32.mrb[33].mxu0  ;;  %1286 = vmatprep.mubr.f32.mxu1 %v1116_v54 }
 0x3c0   : > { %1287 = vmatmul.mubr.f32.gmra.mrb[30].mxu1 %v1098_v30 }
 0x3c1   : > { %v1117_v61 = vmul.f32 %v1108_v56, %v1075_v58  ;;  %2282 = vmatpush3.bf16.msra.mxu1 %v3242_v42  ;;  %v1099_v62 = vmul.f32 %v1090_v57, %v1075_v58  ;;  %v1133_v42 = vmul.f32 %v1124_v12, %v1065_v46  ;;  %v1135_v14 = vmul.f32 %v1126_v44, %v1075_v58 }
 0x3c2   : > { %v1079_v63 = vpop.f32.mrb[34].mxu0  ;;  %2275 = vmatprep.subr.bf16.mxu1 %v2648_v18  ;;  %v1125_v18 = vld [vmem:[%s2893_s22 + $0x30] sm:$0xff] }
 0x3c3   : > { %v1080_v3 = vadd.f32 %v3296_v49, %v1079_v63  ;;  %v2064_v4 = vpop.f32.mrb[35].mxu0  ;;  %1291 = vmatprep.mubr.f32.mxu1 %v1117_v61  ;;  %v1134_v49 = vmul.f32 %v1125_v18, %v1070_v41 }
 0x3c4   : > { %1292 = vmatmul.mubr.f32.gmra.mrb[32].mxu1 %v1099_v62 }
 0x3c5   : > { %v1118_v6 = vmul.f32 %v1109_v36, %v1080_v3  ;;  %v1100_v7 = vmul.f32 %v1091_v0, %v1080_v3  ;;  %2283 = vmatpush3.bf16.msra.mxu1 %v3274_v52  ;;  %v1127_v52 = vld [vmem:[%s2893_s22 + $0x40] sm:$0xff]  ;;  %s3373_s22 = scalar_lea.vmem [#allocation7], %s2287_s25   ;;  %s1777_s25 = smul.u32 (%p3496_p4), 72, %s2725_s17 }
 0x3c6   : > { %v1136_v15 = vmul.f32 %v1127_v52, %v1080_v3 }
 0x3c7   : > { %1296 = vmatprep.mubr.f32.mxu1 %v1118_v6  ;;  %s3408_s28 = scalar_lea.vmem (%p3496_p4), %s3473_s10, %s1777_s25  }
 0x3c8   : > { %1297 = vmatmul.mubr.f32.gmra.mrb[34].mxu1 %v1100_v7 }
 0x3c9   : > { %2112 = vmatprep.mubr.msk.f32.mxu1 %vm2649_vm0, %v2650_v9 }
 0x3cc   : > { %2113 = vmatmul.mubr.f32.vlgmr.msra.gmra.mrb[36].mxu1 %v1133_v42 }
 0x3cd   : > { %2115 = vmatprep.mubr.msk.f32.mxu1 %vm2649_vm0, %v2650_v9 }
 0x3d0   : > { %2116 = vmatmul.mubr.f32.gmra.mrb[38].mxu1 %v1134_v49 }
 0x3d1   : > { %2118 = vmatprep.mubr.msk.f32.mxu1 %vm2649_vm0, %v2650_v9 }
 0x3d4   : > { %2119 = vmatmul.mubr.f32.gmra.mrb[40].mxu1 %v1135_v14 }
 0x3d5   : > { %2121 = vmatprep.mubr.msk.f32.mxu1 %vm2649_vm0, %v2650_v9 }
 0x3d8   : > { %2122 = vmatmul.mubr.f32.gmra.mrb[42].mxu1 %v1136_v15 }
 0x47a   : > { %v1368_v16 = vpop.f32.mrb[36].mxu0 }
 0x47b   : > { %v1954_v5 = vpop.f32.mrb[18].mxu1  ;;  %v2099_v25 = vpop.f32.mrb[37].mxu0 }
 0x47c   : > { %v1955_v21 = vpop.f32.mrb[19].mxu1 }
 0x47d   : > { %v1956_v22 = vadd.f32 %v1955_v21, %v1954_v5 }
 0x47e   : > { %v1373_v1 = vpop.f32.mrb[38].mxu0 }
 0x47f   : > { %v1259_v23 = vadd.f32 %v1956_v22, %v3368_v20  ;;  %v1957_v50 = vpop.f32.mrb[20].mxu1  ;;  %v2102_v26 = vpop.f32.mrb[39].mxu0 }
 0x480   : > { %v1958_v9 = vpop.f32.mrb[21].mxu1 }
 0x481   : > { %v1369_v27 = vadd.f32 %v1368_v16, %v1259_v23  ;;  %v1959_v28 = vadd.f32 %v1958_v9, %v1957_v50 }
 0x482   : > { %v1378_v29 = vpop.f32.mrb[40].mxu0 }
 0x483   : > { %1413 = vst.msk [vmem:[%s3373_s22] sm:$0xff] %vm1412_vm1, %v1369_v27  ;;  %v1264_v53 = vadd.f32 %v1959_v28, %v3368_v20  ;;  %v1960_v31 = vpop.f32.mrb[22].mxu1  ;;  %v2105_v13 = vpop.f32.mrb[41].mxu0 }
 0x484   : > { %v1961_v32 = vpop.f32.mrb[23].mxu1 }
 0x485   : > { %v1374_v34 = vadd.f32 %v1373_v1, %v1264_v53  ;;  %v1962_v35 = vadd.f32 %v1961_v32, %v1960_v31 }
 0x486   : > { %v1383_v59 = vpop.f32.mrb[42].mxu0 }
 0x487   : > { %1414 = vst.msk [vmem:[%s3373_s22 + $0x8] sm:$0xff] %vm1412_vm1, %v1374_v34  ;;  %v1269_v37 = vadd.f32 %v1962_v35, %v3368_v20  ;;  %v1963_v38 = vpop.f32.mrb[24].mxu1  ;;  %v2108_v39 = vpop.f32.mrb[43].mxu0 }
 0x488   : > { %v1964_v40 = vpop.f32.mrb[25].mxu1 }
 0x489   : > { %v1379_v19 = vadd.f32 %v1378_v29, %v1269_v37  ;;  %v1965_v2 = vadd.f32 %v1964_v40, %v1963_v38 }
 0x48a   : > { %v1388_v43 = vpop.f32.mrb[44].mxu0 }
 0x48b   : > { %1415 = vst.msk [vmem:[%s3373_s22 + $0x10] sm:$0xff] %vm1412_vm1, %v1379_v19  ;;  %v1274_v45 = vadd.f32 %v1965_v2, %v3368_v20  ;;  %v1966_v17 = vpop.f32.mrb[26].mxu1  ;;  %v2111_v8 = vpop.f32.mrb[45].mxu0 }
 0x48c   : > { %v1967_v46 = vpop.f32.mrb[27].mxu1 }
 0x48d   : > { %v1384_v10 = vadd.f32 %v1383_v59, %v1274_v45  ;;  %v1968_v24 = vadd.f32 %v1967_v46, %v1966_v17 }
 0x48f   : > { %1416 = vst.msk [vmem:[%s3373_s22 + $0x18] sm:$0xff] %vm1412_vm1, %v1384_v10  ;;  %v1279_v47 = vadd.f32 %v1968_v24, %v3368_v20  ;;  %v1969_v48 = vpop.f32.mrb[28].mxu1 }
 0x490   : > { %v1970_v11 = vpop.f32.mrb[29].mxu1 }
 0x491   : > { %v1389_v33 = vadd.f32 %v1388_v43, %v1279_v47  ;;  %v1971_v41 = vadd.f32 %v1970_v11, %v1969_v48 }
 0x493   : > { %1417 = vst.msk [vmem:[%s3373_s22 + $0x20] sm:$0xff] %vm1412_vm1, %v1389_v33  ;;  %v1972_v51 = vpop.f32.mrb[30].mxu1  ;;  %v1284_v62 = vadd.f32 %v1971_v41, %v3368_v20 }
 0x494   : > { %v1973_v54 = vpop.f32.mrb[31].mxu1 }
 0x495   : > { %v1974_v30 = vadd.f32 %v1973_v54, %v1972_v51 }
 0x497   : > { %v1975_v55 = vpop.f32.mrb[32].mxu1  ;;  %v1289_v3 = vadd.f32 %v1974_v30, %v3368_v20 }
 0x498   : > { %v1976_v56 = vpop.f32.mrb[33].mxu1 }
 0x499   : > { %v1977_v57 = vadd.f32 %v1976_v56, %v1975_v55 }
 0x49b   : > { %v1978_v58 = vpop.f32.mrb[34].mxu1  ;;  %v1294_v12 = vadd.f32 %v1977_v57, %v3368_v20 }
 0x49c   : > { %v1979_v60 = vpop.f32.mrb[35].mxu1 }
 0x49d   : > { %v1980_v61 = vadd.f32 %v1979_v60, %v1978_v58 }
 0x49f   : > { %v1393_v63 = vpop.f32.mrb[36].mxu1  ;;  %v1299_v44 = vadd.f32 %v1980_v61, %v3368_v20 }
 0x4a0   : > { %v1394_v36 = vadd.f32 %v1393_v63, %v1284_v62  ;;  %v2114_v0 = vpop.f32.mrb[37].mxu1 }
 0x4a2   : > { %1418 = vst.msk [vmem:[%s3373_s22 + $0x28] sm:$0xff] %vm1412_vm1, %v1394_v36 }
 0x4a3   : > { %v1398_v4 = vpop.f32.mrb[38].mxu1 }
 0x4a4   : > { %v1399_v6 = vadd.f32 %v1398_v4, %v1289_v3  ;;  %v2117_v7 = vpop.f32.mrb[39].mxu1 }
 0x4a6   : > { %1419 = vst.msk [vmem:[%s3373_s22 + $0x30] sm:$0xff] %vm1412_vm1, %v1399_v6 }
 0x4a7   : > { %v1403_v42 = vpop.f32.mrb[40].mxu1 }
 0x4a8   : > { %v1404_v18 = vadd.f32 %v1403_v42, %v1294_v12  ;;  %v2120_v49 = vpop.f32.mrb[41].mxu1  ;;  %1428 = sbr.rel (!%p3496_p4) target bundleno = 1260 (0x4ec), region = 76 }
 0x4aa   : > { %1420 = vst.msk [vmem:[%s3373_s22 + $0x38] sm:$0xff] %vm1412_vm1, %v1404_v18 }
 0x4ab   : > { %v1408_v14 = vpop.f32.mrb[42].mxu1 }
 0x4ac   : > { %v1409_v52 = vadd.f32 %v1408_v14, %v1299_v44  ;;  %v2123_v15 = vpop.f32.mrb[43].mxu1 }
 0x4ae   : > { %1421 = vst.msk [vmem:[%s3373_s22 + $0x40] sm:$0xff] %vm1412_vm1, %v1409_v52 }
 0x4af   : > { %s3510_s20 = smov (!%p1431_p8, %s1430_s20), 9 }
 0x4b0   : > { %s1761_s16 = sshll.u32 %s3510_s20, 7 }
 0x4b1   : > { %p1764_p10 = scmp.eq.s32.totalorder %s1761_s16, 0 }
 0x4b2   : > { %2443 = sdivrem.u32 (!%p1764_p10), %s3510_s20, 9 }
 0x4b3   : > { %1439 = sbr.rel (%p1764_p10) target bundleno = 1260 (0x4ec), region = 80 }
 0x4bb   : > { %s3414_s24 = spop.drf %2443 }
 0x4bc   : > { %p1765_p13 = scmp.le.s32.totalorder %s3414_s24, 0 }
 0x4bd   : > { %s3497_s17 = smov (!%p1765_p13), %s3408_s28  ;;  %s3498_s26 = smov (!%p1765_p13), %s3373_s22 }
 0x4be   : > { %1661 = sbr.rel (%p1765_p13) target bundleno = 1231 (0x4cf), region = 177  ;;  %s3423_s0 = smov (!%p1765_p13), 0  }
 0x4bf   : > { %s3425_s19 = smov (!%p1765_p13), 0  }
 0x4c5 LB: >> { %v1519_v16 = vld [vmem:[%s2613_s26] sm:$0xff]  ;;  %v1521_v5 = vld [vmem:[%s2613_s26 + $0x8] sm:$0xff]  ;;  %v1523_v25 = vld [vmem:[%s2613_s26 + $0x10] sm:$0xff]  ;;  %s1537_s23 = sadd.s32 1, %s2617_s0  ;;  %s1513_s19 = sadd.s32 1, %s2621_s19   ;;  %s2621_s19 = sphi %s3425_s19, %s1513_s19   ;;  %s2617_s0 = sphi %s3423_s0, %s3499_s0   ;;  %s2613_s26 = sphi %s3498_s26, %s1542_s26   ;;  %s2609_s17 = sphi %s3497_s17, %s1543_s17  }
 0x4c6   : >> { %1520 = vst [vmem:[%s2609_s17] sm:$0xff] %v1519_v16  ;;  %1522 = vst [vmem:[%s2609_s17 + $0x8] sm:$0xff] %v1521_v5  ;;  %v1525_v20 = vld [vmem:[%s2613_s26 + $0x18] sm:$0xff]  ;;  %v1527_v21 = vld [vmem:[%s2613_s26 + $0x20] sm:$0xff]  ;;  %p1538_p11 = scmp.ge.s32.totalorder %s1537_s23, %s3414_s24  ;;  %p1512_p1 = scmp.ge.s32.totalorder %s1513_s19, %s3414_s24 }
 0x4c7   : >> { %1524 = vst [vmem:[%s2609_s17 + $0x10] sm:$0xff] %v1523_v25  ;;  %v1529_v22 = vld [vmem:[%s2613_s26 + $0x28] sm:$0xff]  ;;  %1526 = vst [vmem:[%s2609_s17 + $0x18] sm:$0xff] %v1525_v20  ;;  %v1531_v1 = vld [vmem:[%s2613_s26 + $0x30] sm:$0xff] }
 0x4c8   : >> { %1528 = vst [vmem:[%s2609_s17 + $0x20] sm:$0xff] %v1527_v21  ;;  %1530 = vst [vmem:[%s2609_s17 + $0x28] sm:$0xff] %v1529_v22  ;;  %v1533_v23 = vld [vmem:[%s2613_s26 + $0x38] sm:$0xff]  ;;  %v1535_v50 = vld [vmem:[%s2613_s26 + $0x40] sm:$0xff]  ;;  %s3512_s23 = smov (%p1538_p11, %s1537_s23), 0  ;;  %1515 = sbr.rel (!%p1512_p1) target bundleno = 1221 (0x4c5), region = 183 }
 0x4c9   : >> { %1532 = vst [vmem:[%s2609_s17 + $0x30] sm:$0xff] %v1531_v1  ;;  %1534 = vst [vmem:[%s2609_s17 + $0x38] sm:$0xff] %v1533_v23  ;;  %s1540_s11 = smul.u32 72, %s3512_s23  ;;  %s3499_s0 = smov %s3512_s23 }
 0x4ca   : >> { %1536 = vst [vmem:[%s2609_s17 + $0x40] sm:$0xff] %v1535_v50 }
 0x4cb   : >> { %s1542_s26 = scalar_lea.vmem %s3373_s22, %s1540_s11 [#allocation7]   ;;  %s1543_s17 = scalar_lea.vmem %s3408_s28, %s1540_s11  }
 0x4cf PF: > { %2445 = sdivrem.u32 %s3510_s20, 9 }
 0x4d0   : > { %s1766_s27 = smul.u32 72, %s3414_s24 }
 0x4d2   : > { %s1548_s29 = scalar_lea.vmem %s3373_s22, %s1766_s27 [#allocation7]   ;;  %s1550_s13 = scalar_lea.vmem %s3408_s28, %s1766_s27  }
 0x4d8   : > { %s2446_s18 = spop.drf %2445 }
 0x4d9   : > { %p1768_p3 = scmp.le.s32.totalorder %s2446_s18, 0 }
 0x4da   : > { %s2623_s4 = smov (!%p1768_p3), %s1550_s13   ;;  %s2627_s21 = smov (!%p1768_p3), %s1548_s29  }
 0x4db   : > { %1675 = sbr.rel (%p1768_p3) target bundleno = 1260 (0x4ec), region = 188  ;;  %s2631_s25 = smov (!%p1768_p3), 0  }
 0x4dc   : > { %s2635_s12 = smov (!%p1768_p3), 0  }
 0x4e2 LB: >> { %v1560_v26 = vld [vmem:[%s2629_s21] sm:$0xff]  ;;  %s1562_s30 = sadd.s32 1, %s2633_s25  ;;  %s1554_s12 = sadd.s32 1, %s2637_s12   ;;  %s2637_s12 = sphi %s2635_s12, %s1554_s12   ;;  %s2633_s25 = sphi %s2631_s25, %s2632_s25   ;;  %s2629_s21 = sphi %s2627_s21, %s1567_s21   ;;  %s2625_s4 = sphi %s2623_s4, %s1568_s4  }
 0x4e3   : >> { %1561 = vst [vmem:[%s2625_s4] sm:$0xff] %v1560_v26  ;;  %p1563_p6 = scmp.ge.s32.totalorder %s1562_s30, %s2446_s18  ;;  %p1553_p9 = scmp.ge.s32.totalorder %s1554_s12, %s2446_s18 }
 0x4e5   : >> { %s3514_s30 = smov (%p1563_p6, %s1562_s30), 0  ;;  %1556 = sbr.rel (!%p1553_p9) target bundleno = 1250 (0x4e2), region = 194 }
 0x4e6   : >> { %s1769_s22 = sshll.u32 %s3514_s30, 3  ;;  %s2632_s25 = smov %s3514_s30  }
 0x4e7   : >> { %s1567_s21 = scalar_lea.vmem %s1548_s29, %s1769_s22 [#allocation7]   ;;  %s1568_s4 = scalar_lea.vmem %s1550_s13, %s1769_s22  }
 0x4ec PF: > { %s3500_s16 = sld [smem:[#allocation11_spill]]  ;;  %s3501_s20 = sld [smem:[#allocation12_spill]] }
 0x4ed   : > { %s3502_s13 = smov %s2597_s14  ;;  %s3503_s14 = smov %s2601_s15 }
 0x4f2   : > { %p23_p7 = scmp.ge.s32.totalorder %s3500_s16, 4   ;;  %s3504_s15 = smov %s3501_s20 }
 0x4f4   :  { %25 = sbr.rel (!%p23_p7) target bundleno = 8 (0x8), region = 205 }
 0x4fb   :  { %1584 = vsyncpa [#allocation3], 1 }
 0x4fc   :  { %1586 = vsyncpa [#allocation3 + $0x1], 1 }
 0x4fd   :  { %1587 = vsyncpa [#allocation5], 1 }
 0x4fe   :  { %1589 = vsyncpa [#allocation5 + $0x1], 1 }

</bundles_post_ra>
